<compile_context>
chip_gen: v7x
topology: tpu7x:2x2x1
jax: 0.10.0
libtpu: 0.0.40
codegen_flags: <defaults>
</compile_context>

<pallas_src>
import jax
import jax.numpy as jnp
from jax.experimental import pallas as pl
from jax.experimental.pallas import tpu as pltpu


def lattent_transformer_kernel(x_ref, c_ref, wq_ref, wk_ref, wv_ref,
                               wo_ref, bo_ref, out_ref):
    """One grid step processes `Bb` batch elements with all heads batched.

    x_ref  : (Bb, Nq, D)  bf16 query tokens
    c_ref  : (Bb, Nk, D)  bf16 context tokens
    wq_ref : (H, D, d)    bf16 per-head to_q weight (scale pre-folded)
    wk_ref : (H, D, d)    bf16 per-head to_kv weight, K half
    wv_ref : (H, D, d)    bf16 per-head to_kv weight, V half
    wo_ref : (H, d, D)    bf16 per-head to_out weight
    bo_ref : (1, D)       f32  to_out bias
    out_ref: (Bb, Nq, D)  f32  output
    """
    Bb, Nq, D = x_ref.shape
    _, Nk, _ = c_ref.shape
    H, _, d = wq_ref.shape
    G = Bb * H                      # attention "batch" = batch x heads
    f32, bf16 = jnp.float32, jnp.bfloat16

    # Replicate activations across heads / weights across batch so every
    # contraction is a plain single-batch-dim batched matmul (no in-kernel
    # lane-dim reshapes or transposes).  Only leading dims are touched, so
    # these broadcasts/reshapes are layout-cheap.
    def rep_act(a_ref, n):
        a = jnp.expand_dims(a_ref[...], 1)                 # (Bb, 1, n, D)
        return jnp.broadcast_to(a, (Bb, H, n, D)).reshape(G, n, D)

    def rep_w(w_ref, r, c):
        w = jnp.expand_dims(w_ref[...], 0)                 # (1, H, r, c)
        return jnp.broadcast_to(w, (Bb, H, r, c)).reshape(G, r, c)

    xb = rep_act(x_ref, Nq)                                # (G, Nq, D) bf16
    cb = rep_act(c_ref, Nk)                                # (G, Nk, D) bf16
    wq = rep_w(wq_ref, D, d)                               # (G, D, d)  bf16
    wk = rep_w(wk_ref, D, d)
    wv = rep_w(wv_ref, D, d)
    wo = rep_w(wo_ref, d, D)                               # (G, d, D)  bf16

    # Projections: all heads at once (scale already folded into wq).
    q = jnp.einsum('bnd,bdf->bnf', xb, wq, preferred_element_type=f32)
    k = jnp.einsum('bnd,bdf->bnf', cb, wk, preferred_element_type=f32)
    v = jnp.einsum('bnd,bdf->bnf', cb, wv, preferred_element_type=f32)

    # Attention, batched over (batch*heads).
    sim = jnp.einsum('bif,bjf->bij', q.astype(bf16), k.astype(bf16),
                     preferred_element_type=f32)           # (G, Nq, Nk)
    sim = sim - jnp.max(sim, axis=-1, keepdims=True)       # stable softmax
    p = jnp.exp(sim)
    inv = pl.reciprocal(jnp.sum(p, axis=-1, keepdims=True), approx=True)
    attn = p * inv

    o = jnp.einsum('bij,bjf->bif', attn.astype(bf16), v.astype(bf16),
                   preferred_element_type=f32)             # (G, Nq, d)

    # to_out: per-head partial projections, summed over heads.  This equals
    # concat(heads) @ Wo but never materializes the lane-wise concat.
    y = jnp.einsum('bnf,bfo->bno', o.astype(bf16), wo,
                   preferred_element_type=f32)             # (G, Nq, D)
    y = jnp.sum(y.reshape(Bb, H, Nq, D), axis=1)           # (Bb, Nq, D)
    y = y + jnp.expand_dims(bo_ref[...], 0)                # + bias (1,1,D)

    out_ref[...] = y.astype(out_ref.dtype)                 # lane-dense store


def lattent_transformer(query, context, params, num_heads, *, batch_block=None):
    B, Nq, D = query.shape
    _, Nk, _ = context.shape
    assert D % num_heads == 0
    d = D // num_heads
    scale = float(d) ** -0.5

    # Default: single grid step (best on v5e/v6e, 1 TensorCore).  Set
    # batch_block=1 on v7x to expose a size-B "parallel" axis for its 2 TCs.
    if batch_block is None:
        batch_block = B
    assert B % batch_block == 0
    num_blocks = B // batch_block

    cdt = jnp.bfloat16   # MXU operand dtype (f32 accumulation in-kernel)

    # PyTorch Linear stores (out_features, in_features); transpose so y = x @ W.
    wq_t = params["wq"].T * scale                 # (D, D), softmax scale folded
    wkv_t = params["wkv"].T                       # (D, 2D)
    wk_t, wv_t = wkv_t[:, :D], wkv_t[:, D:]       # split K/V (no in-kernel slice)
    wo_t = params["wo"].T                         # (D, D)

    # Head-major weight layouts so the kernel never reshapes the lane dim.
    #   to_q / to_kv output columns are ordered (h d)  ->  (H, D, d)
    #   to_out input rows are ordered (h d)            ->  (H, d, D)
    def cols_to_heads(w):                         # (D, D_out) -> (H, D, d)
        return w.reshape(D, num_heads, d).transpose(1, 0, 2)

    wq_h = cols_to_heads(wq_t).astype(cdt)
    wk_h = cols_to_heads(wk_t).astype(cdt)
    wv_h = cols_to_heads(wv_t).astype(cdt)
    wo_h = wo_t.reshape(num_heads, d, D).astype(cdt)
    bo = params["bo"].reshape(1, D).astype(jnp.float32)

    q_bf = query.astype(cdt)
    c_bf = context.astype(cdt)

    return pl.pallas_call(
        lattent_transformer_kernel,
        out_shape=jax.ShapeDtypeStruct((B, Nq, D), jnp.float32),
        grid=(num_blocks,),
        in_specs=[
            pl.BlockSpec((batch_block, Nq, D), lambda b: (b, 0, 0)),
            pl.BlockSpec((batch_block, Nk, D), lambda b: (b, 0, 0)),
            pl.BlockSpec((num_heads, D, d), lambda b: (0, 0, 0)),
            pl.BlockSpec((num_heads, D, d), lambda b: (0, 0, 0)),
            pl.BlockSpec((num_heads, D, d), lambda b: (0, 0, 0)),
            pl.BlockSpec((num_heads, d, D), lambda b: (0, 0, 0)),
            pl.BlockSpec((1, D), lambda b: (0, 0)),
        ],
        out_specs=pl.BlockSpec((batch_block, Nq, D), lambda b: (b, 0, 0)),
        compiler_params=pltpu.CompilerParams(
            dimension_semantics=("parallel",),
            vmem_limit_bytes=32 * 1024 * 1024),
    )(q_bf, c_bf, wq_h, wk_h, wv_h, wo_h, bo)


def reference(query, context, params, num_heads):
    """Pure-JAX fp32 reference mirroring the PyTorch forward."""
    B, Nq, D = query.shape
    d = D // num_heads
    scale = float(d) ** -0.5
    q = query @ params["wq"].T
    kv = context @ params["wkv"].T
    k, v = jnp.split(kv, 2, axis=-1)

    def split_heads(t):
        b, n, _ = t.shape
        return (t.reshape(b, n, num_heads, d)
                 .transpose(0, 2, 1, 3)
                 .reshape(b * num_heads, n, d))

    q, k, v = map(split_heads, (q, k, v))
    sim = jnp.einsum("bid,bjd->bij", q, k) * scale
    attn = jax.nn.softmax(sim, axis=-1)
    out = jnp.einsum("bij,bjd->bid", attn, v)
    out = (out.reshape(B, num_heads, Nq, d)
              .transpose(0, 2, 1, 3)
              .reshape(B, Nq, D))
    return out @ params["wo"].T + params["bo"]


if __name__ == "__main__":
    # inner_dim=128 keeps every load/store lane-dense (D % 128 == 0).
    B, Nq, Nk, D, H = 2, 16, 16, 128, 4     # head_dim = 32

    key = jax.random.PRNGKey(0)
    k1, k2, k3, k4, k5, k6 = jax.random.split(key, 6)

    query = jax.random.normal(k1, (B, Nq, D), jnp.float32)
    context = jax.random.normal(k2, (B, Nk, D), jnp.float32)

    # Deterministic parameter init (PyTorch Linear layout: (out, in)).
    params = {
        "wq": jax.random.normal(k3, (D, D), jnp.float32) / jnp.sqrt(D),
        "wkv": jax.random.normal(k4, (2 * D, D), jnp.float32) / jnp.sqrt(D),
        "wo": jax.random.normal(k5, (D, D), jnp.float32) / jnp.sqrt(D),
        "bo": jax.random.normal(k6, (D,), jnp.float32) * 0.01,
    }

    out = lattent_transformer(query, context, params, H)
    jax.block_until_ready(out)

    ref = reference(query, context, params, H)
    assert out.shape == (B, Nq, D)
    # bf16 MXU operands (per perf feedback) => looser tolerance than an
    # fp32-only kernel; still tight enough to catch structural bugs.
    err = jnp.max(jnp.abs(out - ref))
    assert jnp.allclose(out, ref, atol=1e-1, rtol=1e-1), f"max abs err {err}"

    print("KERNEL_OK")
</pallas_src>

<mosaic_0001>
module attributes {stable_mosaic.version = 11 : i64} {
  func.func @lattent_transformer_kernel(%arg0: i32, %arg1: memref<2x16x128xbf16, #tpu.memory_space<vmem>>, %arg2: memref<2x16x128xbf16, #tpu.memory_space<vmem>>, %arg3: memref<4x128x32xbf16, #tpu.memory_space<vmem>>, %arg4: memref<4x128x32xbf16, #tpu.memory_space<vmem>>, %arg5: memref<4x128x32xbf16, #tpu.memory_space<vmem>>, %arg6: memref<4x32x128xbf16, #tpu.memory_space<vmem>>, %arg7: memref<1x128xf32, #tpu.memory_space<vmem>>, %arg8: memref<2x16x128xf32, #tpu.memory_space<vmem>>) attributes {dimension_semantics = [#tpu.dimension_semantics<parallel>], iteration_bounds = array<i64: 1>, scalar_prefetch = 0 : i64, scratch_operands = 0 : i64, tpu.core_type = #tpu.core_type<tc>, window_params = [{transform_indices = @transform_0, window_bounds = array<i64: 2, 16, 128>}, {transform_indices = @transform_1, window_bounds = array<i64: 2, 16, 128>}, {pipeline_mode = #tpu.pipeline_mode<synchronous>, transform_indices = @transform_2, window_bounds = array<i64: 4, 128, 32>}, {pipeline_mode = #tpu.pipeline_mode<synchronous>, transform_indices = @transform_3, window_bounds = array<i64: 4, 128, 32>}, {pipeline_mode = #tpu.pipeline_mode<synchronous>, transform_indices = @transform_4, window_bounds = array<i64: 4, 128, 32>}, {pipeline_mode = #tpu.pipeline_mode<synchronous>, transform_indices = @transform_5, window_bounds = array<i64: 4, 32, 128>}, {pipeline_mode = #tpu.pipeline_mode<synchronous>, transform_indices = @transform_6, window_bounds = array<i64: 1, 128>}, {transform_indices = @transform_7, window_bounds = array<i64: 2, 16, 128>}]} {
    %c0 = arith.constant 0 : index
    %c0_0 = arith.constant 0 : index
    %c0_1 = arith.constant 0 : index
    %0 = vector.load %arg1[%c0, %c0_0, %c0_1] : memref<2x16x128xbf16, #tpu.memory_space<vmem>>, vector<2x16x128xbf16>
    %1 = vector.shape_cast %0 : vector<2x16x128xbf16> to vector<2x1x16x128xbf16>
    %2 = vector.shape_cast %1 : vector<2x1x16x128xbf16> to vector<2x1x16x128xbf16>
    %3 = vector.broadcast %2 : vector<2x1x16x128xbf16> to vector<2x4x16x128xbf16>
    %4 = vector.shape_cast %3 : vector<2x4x16x128xbf16> to vector<8x16x128xbf16>
    %c0_2 = arith.constant 0 : index
    %c0_3 = arith.constant 0 : index
    %c0_4 = arith.constant 0 : index
    %5 = vector.load %arg2[%c0_2, %c0_3, %c0_4] : memref<2x16x128xbf16, #tpu.memory_space<vmem>>, vector<2x16x128xbf16>
    %6 = vector.shape_cast %5 : vector<2x16x128xbf16> to vector<2x1x16x128xbf16>
    %7 = vector.shape_cast %6 : vector<2x1x16x128xbf16> to vector<2x1x16x128xbf16>
    %8 = vector.broadcast %7 : vector<2x1x16x128xbf16> to vector<2x4x16x128xbf16>
    %9 = vector.shape_cast %8 : vector<2x4x16x128xbf16> to vector<8x16x128xbf16>
    %c0_5 = arith.constant 0 : index
    %c0_6 = arith.constant 0 : index
    %c0_7 = arith.constant 0 : index
    %10 = vector.load %arg3[%c0_5, %c0_6, %c0_7] : memref<4x128x32xbf16, #tpu.memory_space<vmem>>, vector<4x128x32xbf16>
    %11 = vector.shape_cast %10 : vector<4x128x32xbf16> to vector<1x4x128x32xbf16>
    %12 = vector.shape_cast %11 : vector<1x4x128x32xbf16> to vector<1x4x128x32xbf16>
    %13 = vector.broadcast %12 : vector<1x4x128x32xbf16> to vector<2x4x128x32xbf16>
    %14 = vector.shape_cast %13 : vector<2x4x128x32xbf16> to vector<8x128x32xbf16>
    %c0_8 = arith.constant 0 : index
    %c0_9 = arith.constant 0 : index
    %c0_10 = arith.constant 0 : index
    %15 = vector.load %arg4[%c0_8, %c0_9, %c0_10] : memref<4x128x32xbf16, #tpu.memory_space<vmem>>, vector<4x128x32xbf16>
    %16 = vector.shape_cast %15 : vector<4x128x32xbf16> to vector<1x4x128x32xbf16>
    %17 = vector.shape_cast %16 : vector<1x4x128x32xbf16> to vector<1x4x128x32xbf16>
    %18 = vector.broadcast %17 : vector<1x4x128x32xbf16> to vector<2x4x128x32xbf16>
    %19 = vector.shape_cast %18 : vector<2x4x128x32xbf16> to vector<8x128x32xbf16>
    %c0_11 = arith.constant 0 : index
    %c0_12 = arith.constant 0 : index
    %c0_13 = arith.constant 0 : index
    %20 = vector.load %arg5[%c0_11, %c0_12, %c0_13] : memref<4x128x32xbf16, #tpu.memory_space<vmem>>, vector<4x128x32xbf16>
    %21 = vector.shape_cast %20 : vector<4x128x32xbf16> to vector<1x4x128x32xbf16>
    %22 = vector.shape_cast %21 : vector<1x4x128x32xbf16> to vector<1x4x128x32xbf16>
    %23 = vector.broadcast %22 : vector<1x4x128x32xbf16> to vector<2x4x128x32xbf16>
    %24 = vector.shape_cast %23 : vector<2x4x128x32xbf16> to vector<8x128x32xbf16>
    %c0_14 = arith.constant 0 : index
    %c0_15 = arith.constant 0 : index
    %c0_16 = arith.constant 0 : index
    %25 = vector.load %arg6[%c0_14, %c0_15, %c0_16] : memref<4x32x128xbf16, #tpu.memory_space<vmem>>, vector<4x32x128xbf16>
    %26 = vector.shape_cast %25 : vector<4x32x128xbf16> to vector<1x4x32x128xbf16>
    %27 = vector.shape_cast %26 : vector<1x4x32x128xbf16> to vector<1x4x32x128xbf16>
    %28 = vector.broadcast %27 : vector<1x4x32x128xbf16> to vector<2x4x32x128xbf16>
    %29 = vector.shape_cast %28 : vector<2x4x32x128xbf16> to vector<8x32x128xbf16>
    "tpu.trace_start"() <{level = 10 : i32, message = "bnd,bdf->bnf"}> : () -> ()
    %cst = arith.constant dense<0.000000e+00> : vector<8x16x32xf32>
    %30 = tpu.matmul %4, %14, %cst {dimension_numbers = #tpu.dot_dimension_numbers<[2], [1], [1], [2], [0, 0, 0, 1, 1, 2], [0], [0]>} : vector<8x16x128xbf16>, vector<8x128x32xbf16>, vector<8x16x32xf32> -> vector<8x16x32xf32>
    %cst_17 = arith.constant dense<0.000000e+00> : vector<8x16x32xf32>
    %31 = tpu.matmul %9, %19, %cst_17 {dimension_numbers = #tpu.dot_dimension_numbers<[2], [1], [1], [2], [0, 0, 0, 1, 1, 2], [0], [0]>} : vector<8x16x128xbf16>, vector<8x128x32xbf16>, vector<8x16x32xf32> -> vector<8x16x32xf32>
    %cst_18 = arith.constant dense<0.000000e+00> : vector<8x16x32xf32>
    %32 = tpu.matmul %9, %24, %cst_18 {dimension_numbers = #tpu.dot_dimension_numbers<[2], [1], [1], [2], [0, 0, 0, 1, 1, 2], [0], [0]>} : vector<8x16x128xbf16>, vector<8x128x32xbf16>, vector<8x16x32xf32> -> vector<8x16x32xf32>
    "tpu.trace_stop"() : () -> ()
    %33 = arith.truncf %30 : vector<8x16x32xf32> to vector<8x16x32xbf16>
    %34 = arith.truncf %31 : vector<8x16x32xf32> to vector<8x16x32xbf16>
    "tpu.trace_start"() <{level = 10 : i32, message = "bif,bjf->bij"}> : () -> ()
    %cst_19 = arith.constant dense<0.000000e+00> : vector<8x16x16xf32>
    %35 = tpu.matmul %33, %34, %cst_19 {dimension_numbers = #tpu.dot_dimension_numbers<[2], [2], [1], [1], [0, 0, 0, 1, 1, 1], [0], [0]>} : vector<8x16x32xbf16>, vector<8x16x32xbf16>, vector<8x16x16xf32> -> vector<8x16x16xf32>
    "tpu.trace_stop"() : () -> ()
    %cst_20 = arith.constant dense<0xFF800000> : vector<8x16xf32>
    %36 = vector.multi_reduction <maximumf>, %35, %cst_20 [2] : vector<8x16x16xf32> to vector<8x16xf32>
    %37 = vector.shape_cast %36 : vector<8x16xf32> to vector<8x16x1xf32>
    %38 = vector.broadcast %37 : vector<8x16x1xf32> to vector<8x16x16xf32>
    %39 = arith.subf %35, %38 : vector<8x16x16xf32>
    %40 = math.exp %39 : vector<8x16x16xf32>
    %cst_21 = arith.constant dense<0.000000e+00> : vector<8x16xf32>
    %41 = vector.multi_reduction <add>, %40, %cst_21 [2] : vector<8x16x16xf32> to vector<8x16xf32>
    %42 = vector.shape_cast %41 : vector<8x16xf32> to vector<8x16x1xf32>
    %43 = tpu.reciprocal %42 {approx = true} : vector<8x16x1xf32> -> vector<8x16x1xf32>
    %44 = vector.broadcast %43 : vector<8x16x1xf32> to vector<8x16x16xf32>
    %45 = arith.mulf %40, %44 : vector<8x16x16xf32>
    %46 = arith.truncf %45 : vector<8x16x16xf32> to vector<8x16x16xbf16>
    %47 = arith.truncf %32 : vector<8x16x32xf32> to vector<8x16x32xbf16>
    "tpu.trace_start"() <{level = 10 : i32, message = "bij,bjf->bif"}> : () -> ()
    %cst_22 = arith.constant dense<0.000000e+00> : vector<8x16x32xf32>
    %48 = tpu.matmul %46, %47, %cst_22 {dimension_numbers = #tpu.dot_dimension_numbers<[2], [1], [1], [2], [0, 0, 0, 1, 1, 2], [0], [0]>} : vector<8x16x16xbf16>, vector<8x16x32xbf16>, vector<8x16x32xf32> -> vector<8x16x32xf32>
    "tpu.trace_stop"() : () -> ()
    %49 = arith.truncf %48 : vector<8x16x32xf32> to vector<8x16x32xbf16>
    "tpu.trace_start"() <{level = 10 : i32, message = "bnf,bfo->bno"}> : () -> ()
    %cst_23 = arith.constant dense<0.000000e+00> : vector<8x16x128xf32>
    %50 = tpu.matmul %49, %29, %cst_23 {dimension_numbers = #tpu.dot_dimension_numbers<[2], [1], [1], [2], [0, 0, 0, 1, 1, 2], [0], [0]>} : vector<8x16x32xbf16>, vector<8x32x128xbf16>, vector<8x16x128xf32> -> vector<8x16x128xf32>
    "tpu.trace_stop"() : () -> ()
    %51 = vector.shape_cast %50 : vector<8x16x128xf32> to vector<2x4x16x128xf32>
    %cst_24 = arith.constant dense<0.000000e+00> : vector<2x16x128xf32>
    %52 = vector.multi_reduction <add>, %51, %cst_24 [1] : vector<2x4x16x128xf32> to vector<2x16x128xf32>
    %c0_25 = arith.constant 0 : index
    %c0_26 = arith.constant 0 : index
    %53 = vector.load %arg7[%c0_25, %c0_26] : memref<1x128xf32, #tpu.memory_space<vmem>>, vector<1x128xf32>
    %54 = vector.shape_cast %53 : vector<1x128xf32> to vector<1x1x128xf32>
    %55 = vector.broadcast %54 : vector<1x1x128xf32> to vector<2x16x128xf32>
    %56 = arith.addf %52, %55 : vector<2x16x128xf32>
    %c0_27 = arith.constant 0 : index
    %c0_28 = arith.constant 0 : index
    %c0_29 = arith.constant 0 : index
    %57 = vector.load %arg8[%c0_27, %c0_28, %c0_29] : memref<2x16x128xf32, #tpu.memory_space<vmem>>, vector<2x16x128xf32>
    tpu.vector_store %arg8[%c0_27, %c0_28, %c0_29], %56 {strides = array<i32>} : memref<2x16x128xf32, #tpu.memory_space<vmem>>, vector<2x16x128xf32>,
    return
  }
  func.func @transform_0(%arg0: i32) -> (i32, i32, i32) {
    %c0_i32 = arith.constant 0 : i32
    %c0_i32_0 = arith.constant 0 : i32
    %c0_i32_1 = arith.constant 0 : i32
    return %arg0, %c0_i32, %c0_i32_0 : i32, i32, i32
  }
  func.func @transform_1(%arg0: i32) -> (i32, i32, i32) {
    %c0_i32 = arith.constant 0 : i32
    %c0_i32_0 = arith.constant 0 : i32
    %c0_i32_1 = arith.constant 0 : i32
    return %arg0, %c0_i32, %c0_i32_0 : i32, i32, i32
  }
  func.func @transform_2(%arg0: i32) -> (i32, i32, i32) {
    %c0_i32 = arith.constant 0 : i32
    %c0_i32_0 = arith.constant 0 : i32
    %c0_i32_1 = arith.constant 0 : i32
    %c0_i32_2 = arith.constant 0 : i32
    return %c0_i32, %c0_i32_0, %c0_i32_1 : i32, i32, i32
  }
  func.func @transform_3(%arg0: i32) -> (i32, i32, i32) {
    %c0_i32 = arith.constant 0 : i32
    %c0_i32_0 = arith.constant 0 : i32
    %c0_i32_1 = arith.constant 0 : i32
    %c0_i32_2 = arith.constant 0 : i32
    return %c0_i32, %c0_i32_0, %c0_i32_1 : i32, i32, i32
  }
  func.func @transform_4(%arg0: i32) -> (i32, i32, i32) {
    %c0_i32 = arith.constant 0 : i32
    %c0_i32_0 = arith.constant 0 : i32
    %c0_i32_1 = arith.constant 0 : i32
    %c0_i32_2 = arith.constant 0 : i32
    return %c0_i32, %c0_i32_0, %c0_i32_1 : i32, i32, i32
  }
  func.func @transform_5(%arg0: i32) -> (i32, i32, i32) {
    %c0_i32 = arith.constant 0 : i32
    %c0_i32_0 = arith.constant 0 : i32
    %c0_i32_1 = arith.constant 0 : i32
    %c0_i32_2 = arith.constant 0 : i32
    return %c0_i32, %c0_i32_0, %c0_i32_1 : i32, i32, i32
  }
  func.func @transform_6(%arg0: i32) -> (i32, i32) {
    %c0_i32 = arith.constant 0 : i32
    %c0_i32_0 = arith.constant 0 : i32
    %c0_i32_1 = arith.constant 0 : i32
    return %c0_i32, %c0_i32_0 : i32, i32
  }
  func.func @transform_7(%arg0: i32) -> (i32, i32, i32) {
    %c0_i32 = arith.constant 0 : i32
    %c0_i32_0 = arith.constant 0 : i32
    %c0_i32_1 = arith.constant 0 : i32
    return %arg0, %c0_i32, %c0_i32_0 : i32, i32, i32
  }
}

</mosaic_0001>

<bundles_post_ra>
// kernel: tpu_custom_call.1
= control target key start
LH: loop header
LB: loop body
LE: loop exit
PB: predicated region body
PF: predicated region fallthrough
CT: control target
= control target key end

     0   :  { %v4463_v1 = vmov 0.0   ;;  %vm4464_vm0 = vmmov 0   ;;  %s5889_s0 = inlined_call_operand.vmem [shape: bf16[2,16,128], index: 0, kind: input, shape index: {}]   ;;  %s5890_s1 = inlined_call_operand.vmem [shape: bf16[2,16,128], index: 1, kind: input, shape index: {}]   ;;  %s5891_s2 = inlined_call_operand.vmem [shape: bf16[4,128,32], index: 2, kind: input, shape index: {}]   ;;  %s5892_s3 = inlined_call_operand.vmem [shape: bf16[4,128,32], index: 3, kind: input, shape index: {}]   ;;  %s5893_s4 = inlined_call_operand.vmem [shape: bf16[4,128,32], index: 4, kind: input, shape index: {}]   ;;  %s5894_s5 = inlined_call_operand.vmem [shape: bf16[4,32,128], index: 5, kind: input, shape index: {}]   ;;  %s5895_s6 = inlined_call_operand.vmem [shape: f32[1,128], index: 6, kind: input, shape index: {}]   ;;  %s5896_s7 = inlined_call_operand.hbm [shape: f32[2,16,128], index: 7, kind: output, shape index: {}]  }
   0x1   :  { %v4511_v0 = vld [vmem:[%s5891_s2] sm:$0xff]   ;;  %3622 = vmatprep.subr.bf16.mxu0 %v4463_v1  ;;  %3642 = vmatprep.subr.bf16.mxu1 %v4463_v1  ;;  %v4524_v3 = vld [vmem:[%s5891_s2 + $0x8] sm:$0xff]   ;;  %v4542_v5 = vld [vmem:[%s5891_s2 + $0x10] sm:$0xff]  }
   0x2   :  { %v4518_v2 = vld [vmem:[%s5891_s2 + $0x40] sm:$0xff]   ;;  %3623 = vmatpush3.bf16.msra.mxu0 %v4511_v0  ;;  %3638 = vmatprep.mubr.msk.bf16.mxu0 %vm4464_vm0, %v4463_v1  ;;  %v4533_v4 = vld [vmem:[%s5891_s2 + $0x48] sm:$0xff]   ;;  %v4549_v6 = vld [vmem:[%s5891_s2 + $0x50] sm:$0xff]  }
   0x3   :  { %3643 = vmatpush3.bf16.msra.mxu1 %v4518_v2  ;;  %3624 = vmatprep.subr.bf16.mxu0 %v4463_v1  ;;  %v4556_v7 = vld [vmem:[%s5891_s2 + $0x18] sm:$0xff]   ;;  %v4570_v9 = vld [vmem:[%s5891_s2 + $0x20] sm:$0xff]   ;;  %v4584_v11 = vld [vmem:[%s5891_s2 + $0x28] sm:$0xff]  }
   0x4   :  { %3644 = vmatprep.subr.bf16.mxu1 %v4463_v1  ;;  %3658 = vmatprep.mubr.msk.bf16.mxu1 %vm4464_vm0, %v4463_v1  ;;  %v4563_v8 = vld [vmem:[%s5891_s2 + $0x58] sm:$0xff]   ;;  %v4577_v10 = vld [vmem:[%s5891_s2 + $0x60] sm:$0xff]   ;;  %v4591_v12 = vld [vmem:[%s5891_s2 + $0x68] sm:$0xff]  }
   0x5   :  { %v4598_v13 = vld [vmem:[%s5891_s2 + $0x30] sm:$0xff]   ;;  %v4612_v15 = vld [vmem:[%s5891_s2 + $0x38] sm:$0xff]   ;;  %v4283_v17 = vld [vmem:[%s5889_s0] sm:$0xff]  }
   0x6   :  { %3625 = vmatpush3.bf16.msra.mxu0 %v4524_v3  ;;  %v4605_v14 = vld [vmem:[%s5891_s2 + $0x70] sm:$0xff]   ;;  %v4619_v16 = vld [vmem:[%s5891_s2 + $0x78] sm:$0xff]   ;;  %v4629_v18 = vld [vmem:[%s5891_s2 + $0x80] sm:$0xff]  }
   0x7   :  { %3645 = vmatpush3.bf16.msra.mxu1 %v4533_v4  ;;  %3626 = vmatprep.subr.bf16.mxu0 %v4463_v1  ;;  %v4636_v19 = vld [vmem:[%s5891_s2 + $0xc0] sm:$0xff]   ;;  %v4643_v20 = vld [vmem:[%s5891_s2 + $0x88] sm:$0xff]   ;;  %v4661_v22 = vld [vmem:[%s5891_s2 + $0x90] sm:$0xff]  }
   0x8   :  { %3646 = vmatprep.subr.bf16.mxu1 %v4463_v1  ;;  %v4650_v21 = vld [vmem:[%s5891_s2 + $0xc8] sm:$0xff]   ;;  %v4668_v23 = vld [vmem:[%s5891_s2 + $0xd0] sm:$0xff]   ;;  %v4675_v24 = vld [vmem:[%s5891_s2 + $0x98] sm:$0xff]  }
   0x9   :  { %v4682_v25 = vld [vmem:[%s5891_s2 + $0xd8] sm:$0xff]   ;;  %v4689_v26 = vld [vmem:[%s5891_s2 + $0xa0] sm:$0xff]   ;;  %v4703_v28 = vld [vmem:[%s5891_s2 + $0xa8] sm:$0xff]  }
   0xa   :  { %3627 = vmatpush3.bf16.msra.mxu0 %v4542_v5  ;;  %v4696_v27 = vld [vmem:[%s5891_s2 + $0xe0] sm:$0xff]   ;;  %v4710_v29 = vld [vmem:[%s5891_s2 + $0xe8] sm:$0xff]   ;;  %v4717_v30 = vld [vmem:[%s5891_s2 + $0xb0] sm:$0xff]  }
   0xb   :  { %3647 = vmatpush3.bf16.msra.mxu1 %v4549_v6  ;;  %3628 = vmatprep.subr.bf16.mxu0 %v4463_v1  ;;  %v4724_v31 = vld [vmem:[%s5891_s2 + $0xf0] sm:$0xff]   ;;  %v4731_v32 = vld [vmem:[%s5891_s2 + $0xb8] sm:$0xff]   ;;  %v4300_v34 = vld [vmem:[%s5889_s0 + $0x8] sm:$0xff]  }
   0xc   :  { %3648 = vmatprep.subr.bf16.mxu1 %v4463_v1  ;;  %v4738_v33 = vld [vmem:[%s5891_s2 + $0xf8] sm:$0xff]  }
   0xe   :  { %3629 = vmatpush3.bf16.msra.mxu0 %v4556_v7 }
   0xf   :  { %3649 = vmatpush3.bf16.msra.mxu1 %v4563_v8  ;;  %3630 = vmatprep.subr.bf16.mxu0 %v4463_v1 }
  0x10   :  { %3650 = vmatprep.subr.bf16.mxu1 %v4463_v1 }
  0x12   :  { %3631 = vmatpush3.bf16.msra.mxu0 %v4570_v9 }
  0x13   :  { %3651 = vmatpush3.bf16.msra.mxu1 %v4577_v10  ;;  %3632 = vmatprep.subr.bf16.mxu0 %v4463_v1 }
  0x14   :  { %3652 = vmatprep.subr.bf16.mxu1 %v4463_v1 }
  0x16   :  { %3633 = vmatpush3.bf16.msra.mxu0 %v4584_v11 }
  0x17   :  { %3653 = vmatpush3.bf16.msra.mxu1 %v4591_v12  ;;  %3634 = vmatprep.subr.bf16.mxu0 %v4463_v1 }
  0x18   :  { %3654 = vmatprep.subr.bf16.mxu1 %v4463_v1 }
  0x1a   :  { %3635 = vmatpush3.bf16.msra.mxu0 %v4598_v13 }
  0x1b   :  { %3655 = vmatpush3.bf16.msra.mxu1 %v4605_v14  ;;  %3636 = vmatprep.subr.bf16.mxu0 %v4463_v1 }
  0x1c   :  { %3656 = vmatprep.subr.bf16.mxu1 %v4463_v1 }
  0x1e   :  { %3637 = vmatpush3.bf16.msra.mxu0 %v4612_v15 }
  0x1f   :  { %3657 = vmatpush3.bf16.msra.mxu1 %v4619_v16  ;;  %3662 = vmatprep.subr.bf16.mxu0 %v4463_v1 }
  0x20   :  { %3682 = vmatprep.subr.bf16.mxu1 %v4463_v1 }
  0x21   :  { %3639 = vmatmul.mubr.bf16.vlgmr.msra.gmra.mrb[0].mxu0 %v4283_v17 }
  0x22   :  { %3659 = vmatmul.mubr.bf16.vlgmr.msra.gmra.mrb[0].mxu1 %v4283_v17  ;;  %3663 = vmatpush3.bf16.msra.mxu0 %v4629_v18 }
  0x23   :  { %3683 = vmatpush3.bf16.msra.mxu1 %v4636_v19  ;;  %3664 = vmatprep.subr.bf16.mxu0 %v4463_v1 }
  0x24   :  { %3684 = vmatprep.subr.bf16.mxu1 %v4463_v1  ;;  %3678 = vmatprep.mubr.msk.bf16.mxu0 %vm4464_vm0, %v4463_v1 }
  0x25   :  { %3698 = vmatprep.mubr.msk.bf16.mxu1 %vm4464_vm0, %v4463_v1 }
  0x26   :  { %3665 = vmatpush3.bf16.msra.mxu0 %v4643_v20 }
  0x27   :  { %3685 = vmatpush3.bf16.msra.mxu1 %v4650_v21  ;;  %3666 = vmatprep.subr.bf16.mxu0 %v4463_v1 }
  0x28   :  { %3686 = vmatprep.subr.bf16.mxu1 %v4463_v1 }
  0x2a   :  { %3667 = vmatpush3.bf16.msra.mxu0 %v4661_v22 }
  0x2b   :  { %3687 = vmatpush3.bf16.msra.mxu1 %v4668_v23  ;;  %3668 = vmatprep.subr.bf16.mxu0 %v4463_v1 }
  0x2c   :  { %3688 = vmatprep.subr.bf16.mxu1 %v4463_v1 }
  0x2e   :  { %3669 = vmatpush3.bf16.msra.mxu0 %v4675_v24 }
  0x2f   :  { %3689 = vmatpush3.bf16.msra.mxu1 %v4682_v25  ;;  %3670 = vmatprep.subr.bf16.mxu0 %v4463_v1 }
  0x30   :  { %3690 = vmatprep.subr.bf16.mxu1 %v4463_v1 }
  0x32   :  { %3671 = vmatpush3.bf16.msra.mxu0 %v4689_v26 }
  0x33   :  { %3691 = vmatpush3.bf16.msra.mxu1 %v4696_v27  ;;  %3672 = vmatprep.subr.bf16.mxu0 %v4463_v1 }
  0x34   :  { %3692 = vmatprep.subr.bf16.mxu1 %v4463_v1 }
  0x36   :  { %3673 = vmatpush3.bf16.msra.mxu0 %v4703_v28 }
  0x37   :  { %3693 = vmatpush3.bf16.msra.mxu1 %v4710_v29  ;;  %3674 = vmatprep.subr.bf16.mxu0 %v4463_v1 }
  0x38   :  { %3694 = vmatprep.subr.bf16.mxu1 %v4463_v1 }
  0x3a   :  { %3675 = vmatpush3.bf16.msra.mxu0 %v4717_v30 }
  0x3b   :  { %3695 = vmatpush3.bf16.msra.mxu1 %v4724_v31  ;;  %3676 = vmatprep.subr.bf16.mxu0 %v4463_v1 }
  0x3c   :  { %3696 = vmatprep.subr.bf16.mxu1 %v4463_v1 }
  0x3e   :  { %3677 = vmatpush3.bf16.msra.mxu0 %v4731_v32 }
  0x3f   :  { %3697 = vmatpush3.bf16.msra.mxu1 %v4738_v33  ;;  %3702 = vmatprep.subr.bf16.mxu0 %v4463_v1 }
  0x40   :  { %3722 = vmatprep.subr.bf16.mxu1 %v4463_v1 }
  0x41   :  { %3679 = vmatmul.mubr.bf16.vlgmr.msra.gmra.mrb[4].mxu0 %v4283_v17 }
  0x42   :  { %3699 = vmatmul.mubr.bf16.vlgmr.msra.gmra.mrb[4].mxu1 %v4283_v17  ;;  %3703 = vmatpush3.bf16.msra.mxu0 %v4511_v0 }
  0x43   :  { %3723 = vmatpush3.bf16.msra.mxu1 %v4518_v2  ;;  %3704 = vmatprep.subr.bf16.mxu0 %v4463_v1 }
  0x44   :  { %3724 = vmatprep.subr.bf16.mxu1 %v4463_v1  ;;  %3718 = vmatprep.mubr.msk.bf16.mxu0 %vm4464_vm0, %v4463_v1 }
  0x45   :  { %3738 = vmatprep.mubr.msk.bf16.mxu1 %vm4464_vm0, %v4463_v1 }
  0x46   :  { %3705 = vmatpush3.bf16.msra.mxu0 %v4524_v3 }
  0x47   :  { %3725 = vmatpush3.bf16.msra.mxu1 %v4533_v4  ;;  %3706 = vmatprep.subr.bf16.mxu0 %v4463_v1 }
  0x48   :  { %3726 = vmatprep.subr.bf16.mxu1 %v4463_v1 }
  0x4a   :  { %3707 = vmatpush3.bf16.msra.mxu0 %v4542_v5 }
  0x4b   :  { %3727 = vmatpush3.bf16.msra.mxu1 %v4549_v6  ;;  %3708 = vmatprep.subr.bf16.mxu0 %v4463_v1 }
  0x4c   :  { %3728 = vmatprep.subr.bf16.mxu1 %v4463_v1 }
  0x4e   :  { %3709 = vmatpush3.bf16.msra.mxu0 %v4556_v7 }
  0x4f   :  { %3729 = vmatpush3.bf16.msra.mxu1 %v4563_v8  ;;  %3710 = vmatprep.subr.bf16.mxu0 %v4463_v1 }
  0x50   :  { %3730 = vmatprep.subr.bf16.mxu1 %v4463_v1 }
  0x52   :  { %3711 = vmatpush3.bf16.msra.mxu0 %v4570_v9 }
  0x53   :  { %3731 = vmatpush3.bf16.msra.mxu1 %v4577_v10  ;;  %3712 = vmatprep.subr.bf16.mxu0 %v4463_v1 }
  0x54   :  { %3732 = vmatprep.subr.bf16.mxu1 %v4463_v1 }
  0x56   :  { %3713 = vmatpush3.bf16.msra.mxu0 %v4584_v11 }
  0x57   :  { %3733 = vmatpush3.bf16.msra.mxu1 %v4591_v12  ;;  %3714 = vmatprep.subr.bf16.mxu0 %v4463_v1 }
  0x58   :  { %3734 = vmatprep.subr.bf16.mxu1 %v4463_v1 }
  0x5a   :  { %3715 = vmatpush3.bf16.msra.mxu0 %v4598_v13 }
  0x5b   :  { %3735 = vmatpush3.bf16.msra.mxu1 %v4605_v14  ;;  %3716 = vmatprep.subr.bf16.mxu0 %v4463_v1 }
  0x5c   :  { %3736 = vmatprep.subr.bf16.mxu1 %v4463_v1 }
  0x5e   :  { %3717 = vmatpush3.bf16.msra.mxu0 %v4612_v15 }
  0x5f   :  { %12 = vsyncpa [#allocation3], 0  ;;  %3737 = vmatpush3.bf16.msra.mxu1 %v4619_v16  ;;  %3742 = vmatprep.subr.bf16.mxu0 %v4463_v1  ;;  %v4820_v35 = vld [vmem:[%s5892_s3] sm:$0xff]   ;;  %v4834_v37 = vld [vmem:[%s5892_s3 + $0x8] sm:$0xff]   ;;  %vm1844_vm1 = vcmask 261120   ;;  %vm2221_vm2 = vcmask 130048  }
  0x60   :  { %3762 = vmatprep.subr.bf16.mxu1 %v4463_v1  ;;  %v4827_v36 = vld [vmem:[%s5892_s3 + $0x40] sm:$0xff]   ;;  %v4841_v38 = vld [vmem:[%s5892_s3 + $0x48] sm:$0xff]   ;;  %v4852_v39 = vld [vmem:[%s5892_s3 + $0x10] sm:$0xff]  }
  0x61   :  { %3719 = vmatmul.mubr.bf16.vlgmr.msra.gmra.mrb[8].mxu0 %v4300_v34  ;;  %v4859_v40 = vld [vmem:[%s5892_s3 + $0x50] sm:$0xff]   ;;  %v4866_v41 = vld [vmem:[%s5892_s3 + $0x18] sm:$0xff]   ;;  %v4880_v43 = vld [vmem:[%s5892_s3 + $0x20] sm:$0xff]  }
  0x62   :  { %3739 = vmatmul.mubr.bf16.vlgmr.msra.gmra.mrb[8].mxu1 %v4300_v34  ;;  %3743 = vmatpush3.bf16.msra.mxu0 %v4629_v18  ;;  %v4873_v42 = vld [vmem:[%s5892_s3 + $0x58] sm:$0xff]   ;;  %v4887_v44 = vld [vmem:[%s5892_s3 + $0x60] sm:$0xff]   ;;  %v4894_v45 = vld [vmem:[%s5892_s3 + $0x28] sm:$0xff]  }
  0x63   :  { %3763 = vmatpush3.bf16.msra.mxu1 %v4636_v19  ;;  %3744 = vmatprep.subr.bf16.mxu0 %v4463_v1  ;;  %v4901_v46 = vld [vmem:[%s5892_s3 + $0x68] sm:$0xff]   ;;  %v4908_v47 = vld [vmem:[%s5892_s3 + $0x30] sm:$0xff]   ;;  %v4922_v49 = vld [vmem:[%s5892_s3 + $0x38] sm:$0xff]  }
  0x64   :  { %3764 = vmatprep.subr.bf16.mxu1 %v4463_v1  ;;  %3758 = vmatprep.mubr.msk.bf16.mxu0 %vm4464_vm0, %v4463_v1  ;;  %v4915_v48 = vld [vmem:[%s5892_s3 + $0x70] sm:$0xff]   ;;  %v4929_v50 = vld [vmem:[%s5892_s3 + $0x78] sm:$0xff]   ;;  %v4935_v51 = vld [vmem:[%s5890_s1] sm:$0xff]  }
  0x65   :  { %3778 = vmatprep.mubr.msk.bf16.mxu1 %vm4464_vm0, %v4463_v1  ;;  %v4941_v52 = vld [vmem:[%s5892_s3 + $0x80] sm:$0xff]   ;;  %v4957_v54 = vld [vmem:[%s5892_s3 + $0x88] sm:$0xff]   ;;  %v4975_v56 = vld [vmem:[%s5892_s3 + $0x90] sm:$0xff]  }
  0x66   :  { %3745 = vmatpush3.bf16.msra.mxu0 %v4643_v20  ;;  %v4948_v53 = vld [vmem:[%s5892_s3 + $0xc0] sm:$0xff]   ;;  %v4964_v55 = vld [vmem:[%s5892_s3 + $0xc8] sm:$0xff]   ;;  %v4982_v57 = vld [vmem:[%s5892_s3 + $0xd0] sm:$0xff]  }
  0x67   :  { %3765 = vmatpush3.bf16.msra.mxu1 %v4650_v21  ;;  %3746 = vmatprep.subr.bf16.mxu0 %v4463_v1  ;;  %v4989_v58 = vld [vmem:[%s5892_s3 + $0x98] sm:$0xff]   ;;  %v5003_v60 = vld [vmem:[%s5892_s3 + $0xa0] sm:$0xff]   ;;  %v5017_v62 = vld [vmem:[%s5892_s3 + $0xa8] sm:$0xff]  }
  0x68   :  { %3766 = vmatprep.subr.bf16.mxu1 %v4463_v1  ;;  %v4996_v59 = vld [vmem:[%s5892_s3 + $0xd8] sm:$0xff]   ;;  %v5010_v61 = vld [vmem:[%s5892_s3 + $0xe0] sm:$0xff]   ;;  %v5024_v63 = vld [vmem:[%s5892_s3 + $0xe8] sm:$0xff]  }
  0x69   :  { %v5031_v0 = vld [vmem:[%s5892_s3 + $0xb0] sm:$0xff]   ;;  %v5045_v3 = vld [vmem:[%s5892_s3 + $0xb8] sm:$0xff]   ;;  %v5096_v5 = vld [vmem:[%s5890_s1 + $0x8] sm:$0xff]  }
  0x6a   :  { %3747 = vmatpush3.bf16.msra.mxu0 %v4661_v22  ;;  %v5038_v2 = vld [vmem:[%s5892_s3 + $0xf0] sm:$0xff]   ;;  %v5052_v4 = vld [vmem:[%s5892_s3 + $0xf8] sm:$0xff]   ;;  %v5152_v16 = vld [vmem:[%s5893_s4] sm:$0xff]  }
  0x6b   :  { %3767 = vmatpush3.bf16.msra.mxu1 %v4668_v23  ;;  %3748 = vmatprep.subr.bf16.mxu0 %v4463_v1  ;;  %v5159_v17 = vld [vmem:[%s5893_s4 + $0x40] sm:$0xff]   ;;  %v5168_v18 = vld [vmem:[%s5893_s4 + $0x8] sm:$0xff]   ;;  %v5186_v20 = vld [vmem:[%s5893_s4 + $0x10] sm:$0xff]  }
  0x6c   :  { %3768 = vmatprep.subr.bf16.mxu1 %v4463_v1  ;;  %v5175_v19 = vld [vmem:[%s5893_s4 + $0x48] sm:$0xff]   ;;  %v5193_v21 = vld [vmem:[%s5893_s4 + $0x50] sm:$0xff]   ;;  %v5200_v22 = vld [vmem:[%s5893_s4 + $0x18] sm:$0xff]  }
  0x6d   :  { %v5207_v23 = vld [vmem:[%s5893_s4 + $0x58] sm:$0xff]  }
  0x6e   :  { %3749 = vmatpush3.bf16.msra.mxu0 %v4675_v24  ;;  %v5214_v24 = vld [vmem:[%s5893_s4 + $0x20] sm:$0xff]  }
  0x6f   :  { %3769 = vmatpush3.bf16.msra.mxu1 %v4682_v25  ;;  %3750 = vmatprep.subr.bf16.mxu0 %v4463_v1  ;;  %v5221_v25 = vld [vmem:[%s5893_s4 + $0x60] sm:$0xff]  }
  0x70   :  { %3770 = vmatprep.subr.bf16.mxu1 %v4463_v1 }
  0x72   :  { %3751 = vmatpush3.bf16.msra.mxu0 %v4689_v26  ;;  %v5228_v26 = vld [vmem:[%s5893_s4 + $0x28] sm:$0xff]  }
  0x73   :  { %3771 = vmatpush3.bf16.msra.mxu1 %v4696_v27  ;;  %3752 = vmatprep.subr.bf16.mxu0 %v4463_v1  ;;  %v5235_v27 = vld [vmem:[%s5893_s4 + $0x68] sm:$0xff]  }
  0x74   :  { %3772 = vmatprep.subr.bf16.mxu1 %v4463_v1 }
  0x76   :  { %3753 = vmatpush3.bf16.msra.mxu0 %v4703_v28 }
  0x77   :  { %3773 = vmatpush3.bf16.msra.mxu1 %v4710_v29  ;;  %3754 = vmatprep.subr.bf16.mxu0 %v4463_v1 }
  0x78   :  { %3774 = vmatprep.subr.bf16.mxu1 %v4463_v1 }
  0x7a   :  { %3755 = vmatpush3.bf16.msra.mxu0 %v4717_v30 }
  0x7b   :  { %3775 = vmatpush3.bf16.msra.mxu1 %v4724_v31  ;;  %3756 = vmatprep.subr.bf16.mxu0 %v4463_v1 }
  0x7c   :  { %3776 = vmatprep.subr.bf16.mxu1 %v4463_v1 }
  0x7e   :  { %3757 = vmatpush3.bf16.msra.mxu0 %v4731_v32 }
  0x7f   :  { %3777 = vmatpush3.bf16.msra.mxu1 %v4738_v33  ;;  %3782 = vmatprep.subr.bf16.mxu0 %v4463_v1  ;;  %v5248_v33 = vld [vmem:[%s5893_s4 + $0x30] sm:$0xff]  }
  0x80   :  { %3802 = vmatprep.subr.bf16.mxu1 %v4463_v1 }
  0x81   :  { %3759 = vmatmul.mubr.bf16.vlgmr.msra.gmra.mrb[12].mxu0 %v4300_v34 }
  0x82   :  { %3779 = vmatmul.mubr.bf16.vlgmr.msra.gmra.mrb[12].mxu1 %v4300_v34  ;;  %3783 = vmatpush3.bf16.msra.mxu0 %v4820_v35 }
  0x83   :  { %3803 = vmatpush3.bf16.msra.mxu1 %v4827_v36  ;;  %3784 = vmatprep.subr.bf16.mxu0 %v4463_v1 }
  0x84   :  { %3804 = vmatprep.subr.bf16.mxu1 %v4463_v1  ;;  %3798 = vmatprep.mubr.msk.bf16.mxu0 %vm4464_vm0, %v4463_v1 }
  0x85   :  { %3818 = vmatprep.mubr.msk.bf16.mxu1 %vm4464_vm0, %v4463_v1 }
  0x86   :  { %3785 = vmatpush3.bf16.msra.mxu0 %v4834_v37 }
  0x87   :  { %3805 = vmatpush3.bf16.msra.mxu1 %v4841_v38  ;;  %3786 = vmatprep.subr.bf16.mxu0 %v4463_v1 }
  0x88   :  { %3806 = vmatprep.subr.bf16.mxu1 %v4463_v1 }
  0x8a   :  { %3787 = vmatpush3.bf16.msra.mxu0 %v4852_v39 }
  0x8b   :  { %3807 = vmatpush3.bf16.msra.mxu1 %v4859_v40  ;;  %3788 = vmatprep.subr.bf16.mxu0 %v4463_v1 }
  0x8c   :  { %3808 = vmatprep.subr.bf16.mxu1 %v4463_v1 }
  0x8e   :  { %3789 = vmatpush3.bf16.msra.mxu0 %v4866_v41 }
  0x8f   :  { %3809 = vmatpush3.bf16.msra.mxu1 %v4873_v42  ;;  %3790 = vmatprep.subr.bf16.mxu0 %v4463_v1 }
  0x90   :  { %3810 = vmatprep.subr.bf16.mxu1 %v4463_v1 }
  0x92   :  { %3791 = vmatpush3.bf16.msra.mxu0 %v4880_v43 }
  0x93   :  { %3811 = vmatpush3.bf16.msra.mxu1 %v4887_v44  ;;  %3792 = vmatprep.subr.bf16.mxu0 %v4463_v1 }
  0x94   :  { %3812 = vmatprep.subr.bf16.mxu1 %v4463_v1 }
  0x96   :  { %3793 = vmatpush3.bf16.msra.mxu0 %v4894_v45 }
  0x97   :  { %3813 = vmatpush3.bf16.msra.mxu1 %v4901_v46  ;;  %3794 = vmatprep.subr.bf16.mxu0 %v4463_v1 }
  0x98   :  { %3814 = vmatprep.subr.bf16.mxu1 %v4463_v1 }
  0x9a   :  { %3795 = vmatpush3.bf16.msra.mxu0 %v4908_v47 }
  0x9b   :  { %3815 = vmatpush3.bf16.msra.mxu1 %v4915_v48  ;;  %3796 = vmatprep.subr.bf16.mxu0 %v4463_v1 }
  0x9c   :  { %3816 = vmatprep.subr.bf16.mxu1 %v4463_v1 }
  0x9e   :  { %3797 = vmatpush3.bf16.msra.mxu0 %v4922_v49 }
  0x9f   :  { %3817 = vmatpush3.bf16.msra.mxu1 %v4929_v50  ;;  %3822 = vmatprep.subr.bf16.mxu0 %v4463_v1 }
  0xa0   :  { %3842 = vmatprep.subr.bf16.mxu1 %v4463_v1 }
  0xa1   :  { %3799 = vmatmul.mubr.bf16.vlgmr.msra.gmra.mrb[16].mxu0 %v4935_v51 }
  0xa2   :  { %3819 = vmatmul.mubr.bf16.vlgmr.msra.gmra.mrb[16].mxu1 %v4935_v51  ;;  %3823 = vmatpush3.bf16.msra.mxu0 %v4941_v52 }
  0xa3   :  { %3843 = vmatpush3.bf16.msra.mxu1 %v4948_v53  ;;  %3824 = vmatprep.subr.bf16.mxu0 %v4463_v1 }
  0xa4   :  { %3844 = vmatprep.subr.bf16.mxu1 %v4463_v1  ;;  %3838 = vmatprep.mubr.msk.bf16.mxu0 %vm4464_vm0, %v4463_v1 }
  0xa5   :  { %3858 = vmatprep.mubr.msk.bf16.mxu1 %vm4464_vm0, %v4463_v1 }
  0xa6   :  { %3825 = vmatpush3.bf16.msra.mxu0 %v4957_v54 }
  0xa7   :  { %3845 = vmatpush3.bf16.msra.mxu1 %v4964_v55  ;;  %3826 = vmatprep.subr.bf16.mxu0 %v4463_v1 }
  0xa8   :  { %3846 = vmatprep.subr.bf16.mxu1 %v4463_v1 }
  0xaa   :  { %3827 = vmatpush3.bf16.msra.mxu0 %v4975_v56 }
  0xab   :  { %3847 = vmatpush3.bf16.msra.mxu1 %v4982_v57  ;;  %3828 = vmatprep.subr.bf16.mxu0 %v4463_v1 }
  0xac   :  { %3848 = vmatprep.subr.bf16.mxu1 %v4463_v1 }
  0xae   :  { %3829 = vmatpush3.bf16.msra.mxu0 %v4989_v58 }
  0xaf   :  { %3849 = vmatpush3.bf16.msra.mxu1 %v4996_v59  ;;  %3830 = vmatprep.subr.bf16.mxu0 %v4463_v1 }
  0xb0   :  { %3850 = vmatprep.subr.bf16.mxu1 %v4463_v1 }
  0xb2   :  { %3831 = vmatpush3.bf16.msra.mxu0 %v5003_v60 }
  0xb3   :  { %3851 = vmatpush3.bf16.msra.mxu1 %v5010_v61  ;;  %3832 = vmatprep.subr.bf16.mxu0 %v4463_v1 }
  0xb4   :  { %3852 = vmatprep.subr.bf16.mxu1 %v4463_v1 }
  0xb6   :  { %3833 = vmatpush3.bf16.msra.mxu0 %v5017_v62 }
  0xb7   :  { %3853 = vmatpush3.bf16.msra.mxu1 %v5024_v63  ;;  %3834 = vmatprep.subr.bf16.mxu0 %v4463_v1 }
  0xb8   :  { %3854 = vmatprep.subr.bf16.mxu1 %v4463_v1 }
  0xba   :  { %3835 = vmatpush3.bf16.msra.mxu0 %v5031_v0 }
  0xbb   :  { %3855 = vmatpush3.bf16.msra.mxu1 %v5038_v2  ;;  %3836 = vmatprep.subr.bf16.mxu0 %v4463_v1 }
  0xbc   :  { %3856 = vmatprep.subr.bf16.mxu1 %v4463_v1 }
  0xbe   :  { %3837 = vmatpush3.bf16.msra.mxu0 %v5045_v3 }
  0xbf   :  { %3857 = vmatpush3.bf16.msra.mxu1 %v5052_v4  ;;  %3862 = vmatprep.subr.bf16.mxu0 %v4463_v1 }
  0xc0   :  { %3882 = vmatprep.subr.bf16.mxu1 %v4463_v1 }
  0xc1   :  { %3839 = vmatmul.mubr.bf16.vlgmr.msra.gmra.mrb[20].mxu0 %v4935_v51 }
  0xc2   :  { %3859 = vmatmul.mubr.bf16.vlgmr.msra.gmra.mrb[20].mxu1 %v4935_v51  ;;  %3863 = vmatpush3.bf16.msra.mxu0 %v4820_v35 }
  0xc3   :  { %3883 = vmatpush3.bf16.msra.mxu1 %v4827_v36  ;;  %3864 = vmatprep.subr.bf16.mxu0 %v4463_v1 }
  0xc4   :  { %3884 = vmatprep.subr.bf16.mxu1 %v4463_v1  ;;  %3878 = vmatprep.mubr.msk.bf16.mxu0 %vm4464_vm0, %v4463_v1 }
  0xc5   :  { %3898 = vmatprep.mubr.msk.bf16.mxu1 %vm4464_vm0, %v4463_v1 }
  0xc6   :  { %3865 = vmatpush3.bf16.msra.mxu0 %v4834_v37  ;;  %v5259_v37 = vld [vmem:[%s5893_s4 + $0x70] sm:$0xff]  }
  0xc7   :  { %3885 = vmatpush3.bf16.msra.mxu1 %v4841_v38  ;;  %3866 = vmatprep.subr.bf16.mxu0 %v4463_v1 }
  0xc8   :  { %3886 = vmatprep.subr.bf16.mxu1 %v4463_v1 }
  0xca   :  { %3867 = vmatpush3.bf16.msra.mxu0 %v4852_v39 }
  0xcb   :  { %3887 = vmatpush3.bf16.msra.mxu1 %v4859_v40  ;;  %3868 = vmatprep.subr.bf16.mxu0 %v4463_v1  ;;  %v5268_v40 = vld [vmem:[%s5893_s4 + $0x38] sm:$0xff]  }
  0xcc   :  { %3888 = vmatprep.subr.bf16.mxu1 %v4463_v1 }
  0xce   :  { %3869 = vmatpush3.bf16.msra.mxu0 %v4866_v41  ;;  %v5275_v41 = vld [vmem:[%s5893_s4 + $0x78] sm:$0xff]  }
  0xcf   :  { %3889 = vmatpush3.bf16.msra.mxu1 %v4873_v42  ;;  %3870 = vmatprep.subr.bf16.mxu0 %v4463_v1  ;;  %v5282_v42 = vld [vmem:[%s5893_s4 + $0x80] sm:$0xff]  }
  0xd0   :  { %3890 = vmatprep.subr.bf16.mxu1 %v4463_v1 }
  0xd2   :  { %3871 = vmatpush3.bf16.msra.mxu0 %v4880_v43  ;;  %v5289_v43 = vld [vmem:[%s5893_s4 + $0xc0] sm:$0xff]  }
  0xd3   :  { %3891 = vmatpush3.bf16.msra.mxu1 %v4887_v44  ;;  %3872 = vmatprep.subr.bf16.mxu0 %v4463_v1  ;;  %v5298_v44 = vld [vmem:[%s5893_s4 + $0x88] sm:$0xff]  }
  0xd4   :  { %3892 = vmatprep.subr.bf16.mxu1 %v4463_v1 }
  0xd6   :  { %3873 = vmatpush3.bf16.msra.mxu0 %v4894_v45  ;;  %v5305_v45 = vld [vmem:[%s5893_s4 + $0xc8] sm:$0xff]  }
  0xd7   :  { %3893 = vmatpush3.bf16.msra.mxu1 %v4901_v46  ;;  %3874 = vmatprep.subr.bf16.mxu0 %v4463_v1  ;;  %v5316_v46 = vld [vmem:[%s5893_s4 + $0x90] sm:$0xff]  }
  0xd8   :  { %3894 = vmatprep.subr.bf16.mxu1 %v4463_v1 }
  0xda   :  { %3875 = vmatpush3.bf16.msra.mxu0 %v4908_v47  ;;  %v5323_v47 = vld [vmem:[%s5893_s4 + $0xd0] sm:$0xff]  }
  0xdb   :  { %3895 = vmatpush3.bf16.msra.mxu1 %v4915_v48  ;;  %3876 = vmatprep.subr.bf16.mxu0 %v4463_v1  ;;  %v5330_v48 = vld [vmem:[%s5893_s4 + $0x98] sm:$0xff]  }
  0xdc   :  { %3896 = vmatprep.subr.bf16.mxu1 %v4463_v1 }
  0xde   :  { %3877 = vmatpush3.bf16.msra.mxu0 %v4922_v49  ;;  %v5337_v49 = vld [vmem:[%s5893_s4 + $0xd8] sm:$0xff]  }
  0xdf   :  { %3897 = vmatpush3.bf16.msra.mxu1 %v4929_v50  ;;  %3902 = vmatprep.subr.bf16.mxu0 %v4463_v1  ;;  %v5344_v50 = vld [vmem:[%s5893_s4 + $0xa0] sm:$0xff]  }
  0xe0   :  { %3922 = vmatprep.subr.bf16.mxu1 %v4463_v1 }
  0xe1   :  { %3879 = vmatmul.mubr.bf16.vlgmr.msra.gmra.mrb[24].mxu0 %v5096_v5 }
  0xe2   :  { %3899 = vmatmul.mubr.bf16.vlgmr.msra.gmra.mrb[24].mxu1 %v5096_v5  ;;  %3903 = vmatpush3.bf16.msra.mxu0 %v4941_v52  ;;  %v5351_v52 = vld [vmem:[%s5893_s4 + $0xe0] sm:$0xff]  }
  0xe3   :  { %3923 = vmatpush3.bf16.msra.mxu1 %v4948_v53  ;;  %3904 = vmatprep.subr.bf16.mxu0 %v4463_v1  ;;  %v5358_v53 = vld [vmem:[%s5893_s4 + $0xa8] sm:$0xff]  }
  0xe4   :  { %3924 = vmatprep.subr.bf16.mxu1 %v4463_v1  ;;  %3918 = vmatprep.mubr.msk.bf16.mxu0 %vm4464_vm0, %v4463_v1 }
  0xe5   :  { %3938 = vmatprep.mubr.msk.bf16.mxu1 %vm4464_vm0, %v4463_v1 }
  0xe6   :  { %3905 = vmatpush3.bf16.msra.mxu0 %v4957_v54  ;;  %v5365_v54 = vld [vmem:[%s5893_s4 + $0xe8] sm:$0xff]  }
  0xe7   :  { %3925 = vmatpush3.bf16.msra.mxu1 %v4964_v55  ;;  %3906 = vmatprep.subr.bf16.mxu0 %v4463_v1 }
  0xe8   :  { %3926 = vmatprep.subr.bf16.mxu1 %v4463_v1 }
  0xea   :  { %3907 = vmatpush3.bf16.msra.mxu0 %v4975_v56 }
  0xeb   :  { %3927 = vmatpush3.bf16.msra.mxu1 %v4982_v57  ;;  %3908 = vmatprep.subr.bf16.mxu0 %v4463_v1 }
  0xec   :  { %3928 = vmatprep.subr.bf16.mxu1 %v4463_v1 }
  0xee   :  { %3909 = vmatpush3.bf16.msra.mxu0 %v4989_v58 }
  0xef   :  { %3929 = vmatpush3.bf16.msra.mxu1 %v4996_v59  ;;  %3910 = vmatprep.subr.bf16.mxu0 %v4463_v1 }
  0xf0   :  { %3930 = vmatprep.subr.bf16.mxu1 %v4463_v1 }
  0xf2   :  { %3911 = vmatpush3.bf16.msra.mxu0 %v5003_v60  ;;  %v5378_v60 = vld [vmem:[%s5893_s4 + $0xb0] sm:$0xff]  }
  0xf3   :  { %3931 = vmatpush3.bf16.msra.mxu1 %v5010_v61  ;;  %3912 = vmatprep.subr.bf16.mxu0 %v4463_v1 }
  0xf4   :  { %v5127_v6 = vpop.f32.mrb[0].mxu0  ;;  %3932 = vmatprep.subr.bf16.mxu1 %v4463_v1 }
  0xf5   :  { %v3640_v7 = vpop.f32.mrb[1].mxu0  ;;  %v5130_v8 = vpop.f32.mrb[0].mxu1 }
  0xf6   :  { %v5132_v9 = vpop.f32.mrb[2].mxu0  ;;  %3913 = vmatpush3.bf16.msra.mxu0 %v5017_v62  ;;  %v3660_v10 = vpop.f32.mrb[1].mxu1  ;;  %v5405_v7 = vld [vmem:[%s5893_s4 + $0xf8] sm:$0xff]  }
  0xf7   :  { %v1828_v11 = vpack.c.bf16 %v5132_v9, %v5127_v6  ;;  %3933 = vmatpush3.bf16.msra.mxu1 %v5024_v63  ;;  %v3641_v12 = vpop.f32.mrb[3].mxu0  ;;  %v5138_v13 = vpop.f32.mrb[2].mxu1  ;;  %3914 = vmatprep.subr.bf16.mxu0 %v4463_v1 }
  0xf8   :  { %v1829_v14 = vpack.c.bf16 %v5138_v13, %v5130_v8  ;;  %v3661_v15 = vpop.f32.mrb[3].mxu1  ;;  %3934 = vmatprep.subr.bf16.mxu1 %v4463_v1 }
  0xfa   :  { %3915 = vmatpush3.bf16.msra.mxu0 %v5031_v0  ;;  %v5389_v0 = vld [vmem:[%s5893_s4 + $0xf0] sm:$0xff]  }
  0xfb   :  { %3935 = vmatpush3.bf16.msra.mxu1 %v5038_v2  ;;  %3916 = vmatprep.subr.bf16.mxu0 %v4463_v1 }
  0xfc   :  { %3936 = vmatprep.subr.bf16.mxu1 %v4463_v1 }
  0xfe   :  { %3917 = vmatpush3.bf16.msra.mxu0 %v5045_v3 }
  0xff   :  { %3937 = vmatpush3.bf16.msra.mxu1 %v5052_v4  ;;  %3942 = vmatprep.subr.bf16.mxu0 %v4463_v1  ;;  %v5398_v4 = vld [vmem:[%s5893_s4 + $0xb8] sm:$0xff]  }
 0x100   :  { %3962 = vmatprep.subr.bf16.mxu1 %v4463_v1 }
 0x101   :  { %3919 = vmatmul.mubr.bf16.vlgmr.msra.gmra.mrb[28].mxu0 %v5096_v5 }
 0x102   :  { %3939 = vmatmul.mubr.bf16.vlgmr.msra.gmra.mrb[28].mxu1 %v5096_v5  ;;  %3943 = vmatpush3.bf16.msra.mxu0 %v5152_v16 }
 0x103   :  { %3963 = vmatpush3.bf16.msra.mxu1 %v5159_v17  ;;  %3944 = vmatprep.subr.bf16.mxu0 %v4463_v1 }
 0x104   :  { %3964 = vmatprep.subr.bf16.mxu1 %v4463_v1  ;;  %3958 = vmatprep.mubr.msk.bf16.mxu0 %vm4464_vm0, %v4463_v1 }
 0x105   :  { %3978 = vmatprep.mubr.msk.bf16.mxu1 %vm4464_vm0, %v4463_v1 }
 0x106   :  { %3945 = vmatpush3.bf16.msra.mxu0 %v5168_v18 }
 0x107   :  { %3965 = vmatpush3.bf16.msra.mxu1 %v5175_v19  ;;  %3946 = vmatprep.subr.bf16.mxu0 %v4463_v1 }
 0x108   :  { %3966 = vmatprep.subr.bf16.mxu1 %v4463_v1 }
 0x10a   :  { %3947 = vmatpush3.bf16.msra.mxu0 %v5186_v20 }
 0x10b   :  { %3967 = vmatpush3.bf16.msra.mxu1 %v5193_v21  ;;  %3948 = vmatprep.subr.bf16.mxu0 %v4463_v1 }
 0x10c   :  { %3968 = vmatprep.subr.bf16.mxu1 %v4463_v1 }
 0x10e   :  { %3949 = vmatpush3.bf16.msra.mxu0 %v5200_v22 }
 0x10f   :  { %3969 = vmatpush3.bf16.msra.mxu1 %v5207_v23  ;;  %3950 = vmatprep.subr.bf16.mxu0 %v4463_v1 }
 0x110   :  { %3970 = vmatprep.subr.bf16.mxu1 %v4463_v1 }
 0x112   :  { %3951 = vmatpush3.bf16.msra.mxu0 %v5214_v24 }
 0x113   :  { %3971 = vmatpush3.bf16.msra.mxu1 %v5221_v25  ;;  %3952 = vmatprep.subr.bf16.mxu0 %v4463_v1 }
 0x114   :  { %v5237_v28 = vpop.f32.mrb[4].mxu0  ;;  %3972 = vmatprep.subr.bf16.mxu1 %v4463_v1 }
 0x115   :  { %v3680_v29 = vpop.f32.mrb[5].mxu0  ;;  %v5240_v30 = vpop.f32.mrb[4].mxu1 }
 0x116   :  { %v5242_v31 = vpop.f32.mrb[6].mxu0  ;;  %3953 = vmatpush3.bf16.msra.mxu0 %v5228_v26  ;;  %v3700_v32 = vpop.f32.mrb[5].mxu1 }
 0x117   :  { %v1830_v34 = vpack.c.bf16 %v5242_v31, %v5237_v28  ;;  %3973 = vmatpush3.bf16.msra.mxu1 %v5235_v27  ;;  %v3681_v35 = vpop.f32.mrb[7].mxu0  ;;  %v5253_v36 = vpop.f32.mrb[6].mxu1  ;;  %3954 = vmatprep.subr.bf16.mxu0 %v4463_v1 }
 0x118   :  { %v1831_v38 = vpack.c.bf16 %v5253_v36, %v5240_v30  ;;  %v3701_v39 = vpop.f32.mrb[7].mxu1  ;;  %3974 = vmatprep.subr.bf16.mxu1 %v4463_v1 }
 0x11a   :  { %3955 = vmatpush3.bf16.msra.mxu0 %v5248_v33 }
 0x11b   :  { %3975 = vmatpush3.bf16.msra.mxu1 %v5259_v37  ;;  %3956 = vmatprep.subr.bf16.mxu0 %v4463_v1 }
 0x11c   :  { %3976 = vmatprep.subr.bf16.mxu1 %v4463_v1 }
 0x11e   :  { %3957 = vmatpush3.bf16.msra.mxu0 %v5268_v40 }
 0x11f   :  { %3977 = vmatpush3.bf16.msra.mxu1 %v5275_v41  ;;  %3982 = vmatprep.subr.bf16.mxu0 %v4463_v1 }
 0x120   :  { %4002 = vmatprep.subr.bf16.mxu1 %v4463_v1 }
 0x121   :  { %3959 = vmatmul.mubr.bf16.vlgmr.msra.gmra.mrb[32].mxu0 %v4935_v51 }
 0x122   :  { %3979 = vmatmul.mubr.bf16.vlgmr.msra.gmra.mrb[32].mxu1 %v4935_v51  ;;  %3983 = vmatpush3.bf16.msra.mxu0 %v5282_v42 }
 0x123   :  { %4003 = vmatpush3.bf16.msra.mxu1 %v5289_v43  ;;  %3984 = vmatprep.subr.bf16.mxu0 %v4463_v1 }
 0x124   :  { %4004 = vmatprep.subr.bf16.mxu1 %v4463_v1  ;;  %3998 = vmatprep.mubr.msk.bf16.mxu0 %vm4464_vm0, %v4463_v1 }
 0x125   :  { %4018 = vmatprep.mubr.msk.bf16.mxu1 %vm4464_vm0, %v4463_v1 }
 0x126   :  { %3985 = vmatpush3.bf16.msra.mxu0 %v5298_v44 }
 0x127   :  { %4005 = vmatpush3.bf16.msra.mxu1 %v5305_v45  ;;  %3986 = vmatprep.subr.bf16.mxu0 %v4463_v1 }
 0x128   :  { %4006 = vmatprep.subr.bf16.mxu1 %v4463_v1 }
 0x12a   :  { %3987 = vmatpush3.bf16.msra.mxu0 %v5316_v46 }
 0x12b   :  { %4007 = vmatpush3.bf16.msra.mxu1 %v5323_v47  ;;  %3988 = vmatprep.subr.bf16.mxu0 %v4463_v1 }
 0x12c   :  { %4008 = vmatprep.subr.bf16.mxu1 %v4463_v1 }
 0x12e   :  { %3989 = vmatpush3.bf16.msra.mxu0 %v5330_v48 }
 0x12f   :  { %4009 = vmatpush3.bf16.msra.mxu1 %v5337_v49  ;;  %3990 = vmatprep.subr.bf16.mxu0 %v4463_v1 }
 0x130   :  { %4010 = vmatprep.subr.bf16.mxu1 %v4463_v1 }
 0x132   :  { %3991 = vmatpush3.bf16.msra.mxu0 %v5344_v50 }
 0x133   :  { %4011 = vmatpush3.bf16.msra.mxu1 %v5351_v52  ;;  %3992 = vmatprep.subr.bf16.mxu0 %v4463_v1 }
 0x134   :  { %v5367_v55 = vpop.f32.mrb[8].mxu0  ;;  %4012 = vmatprep.subr.bf16.mxu1 %v4463_v1 }
 0x135   :  { %v3720_v56 = vpop.f32.mrb[9].mxu0  ;;  %v5370_v57 = vpop.f32.mrb[8].mxu1 }
 0x136   :  { %v5372_v58 = vpop.f32.mrb[10].mxu0  ;;  %3993 = vmatpush3.bf16.msra.mxu0 %v5358_v53  ;;  %v3740_v59 = vpop.f32.mrb[9].mxu1 }
 0x137   :  { %v1832_v61 = vpack.c.bf16 %v5372_v58, %v5367_v55  ;;  %4013 = vmatpush3.bf16.msra.mxu1 %v5365_v54  ;;  %v3721_v62 = vpop.f32.mrb[11].mxu0  ;;  %v5383_v63 = vpop.f32.mrb[10].mxu1  ;;  %3994 = vmatprep.subr.bf16.mxu0 %v4463_v1 }
 0x138   :  { %v1833_v2 = vpack.c.bf16 %v5383_v63, %v5370_v57  ;;  %v3741_v3 = vpop.f32.mrb[11].mxu1  ;;  %4014 = vmatprep.subr.bf16.mxu1 %v4463_v1 }
 0x13a   :  { %3995 = vmatpush3.bf16.msra.mxu0 %v5378_v60 }
 0x13b   :  { %4015 = vmatpush3.bf16.msra.mxu1 %v5389_v0  ;;  %3996 = vmatprep.subr.bf16.mxu0 %v4463_v1 }
 0x13c   :  { %4016 = vmatprep.subr.bf16.mxu1 %v4463_v1 }
 0x13e   :  { %3997 = vmatpush3.bf16.msra.mxu0 %v5398_v4 }
 0x13f   :  { %4017 = vmatpush3.bf16.msra.mxu1 %v5405_v7  ;;  %4022 = vmatprep.subr.bf16.mxu0 %v4463_v1 }
 0x140   :  { %4042 = vmatprep.subr.bf16.mxu1 %v4463_v1 }
 0x141   :  { %3999 = vmatmul.mubr.bf16.vlgmr.msra.gmra.mrb[36].mxu0 %v4935_v51 }
 0x142   :  { %4019 = vmatmul.mubr.bf16.vlgmr.msra.gmra.mrb[36].mxu1 %v4935_v51  ;;  %4023 = vmatpush3.bf16.msra.mxu0 %v5152_v16 }
 0x143   :  { %4043 = vmatpush3.bf16.msra.mxu1 %v5159_v17  ;;  %4024 = vmatprep.subr.bf16.mxu0 %v4463_v1 }
 0x144   :  { %4044 = vmatprep.subr.bf16.mxu1 %v4463_v1  ;;  %4038 = vmatprep.mubr.msk.bf16.mxu0 %vm4464_vm0, %v4463_v1 }
 0x145   :  { %4058 = vmatprep.mubr.msk.bf16.mxu1 %vm4464_vm0, %v4463_v1 }
 0x146   :  { %4025 = vmatpush3.bf16.msra.mxu0 %v5168_v18 }
 0x147   :  { %4045 = vmatpush3.bf16.msra.mxu1 %v5175_v19  ;;  %4026 = vmatprep.subr.bf16.mxu0 %v4463_v1 }
 0x148   :  { %4046 = vmatprep.subr.bf16.mxu1 %v4463_v1 }
 0x14a   :  { %4027 = vmatpush3.bf16.msra.mxu0 %v5186_v20 }
 0x14b   :  { %4047 = vmatpush3.bf16.msra.mxu1 %v5193_v21  ;;  %4028 = vmatprep.subr.bf16.mxu0 %v4463_v1 }
 0x14c   :  { %4048 = vmatprep.subr.bf16.mxu1 %v4463_v1 }
 0x14e   :  { %4029 = vmatpush3.bf16.msra.mxu0 %v5200_v22 }
 0x14f   :  { %4049 = vmatpush3.bf16.msra.mxu1 %v5207_v23  ;;  %4030 = vmatprep.subr.bf16.mxu0 %v4463_v1 }
 0x150   :  { %4050 = vmatprep.subr.bf16.mxu1 %v4463_v1 }
 0x152   :  { %4031 = vmatpush3.bf16.msra.mxu0 %v5214_v24 }
 0x153   :  { %4051 = vmatpush3.bf16.msra.mxu1 %v5221_v25  ;;  %4032 = vmatprep.subr.bf16.mxu0 %v4463_v1 }
 0x154   :  { %v5437_v51 = vpop.f32.mrb[12].mxu0  ;;  %4052 = vmatprep.subr.bf16.mxu1 %v4463_v1 }
 0x155   :  { %v3760_v10 = vpop.f32.mrb[13].mxu0  ;;  %v5440_v12 = vpop.f32.mrb[12].mxu1 }
 0x156   :  { %v5442_v15 = vpop.f32.mrb[14].mxu0  ;;  %4033 = vmatpush3.bf16.msra.mxu0 %v5228_v26  ;;  %v3780_v16 = vpop.f32.mrb[13].mxu1 }
 0x157   :  { %v1834_v17 = vpack.c.bf16 %v5442_v15, %v5437_v51  ;;  %4053 = vmatpush3.bf16.msra.mxu1 %v5235_v27  ;;  %v3761_v18 = vpop.f32.mrb[15].mxu0  ;;  %v5448_v19 = vpop.f32.mrb[14].mxu1  ;;  %4034 = vmatprep.subr.bf16.mxu0 %v4463_v1 }
 0x158   :  { %v1835_v20 = vpack.c.bf16 %v5448_v19, %v5440_v12  ;;  %v3781_v21 = vpop.f32.mrb[15].mxu1  ;;  %4054 = vmatprep.subr.bf16.mxu1 %v4463_v1 }
 0x15a   :  { %4035 = vmatpush3.bf16.msra.mxu0 %v5248_v33 }
 0x15b   :  { %4055 = vmatpush3.bf16.msra.mxu1 %v5259_v37  ;;  %4036 = vmatprep.subr.bf16.mxu0 %v4463_v1 }
 0x15c   :  { %4056 = vmatprep.subr.bf16.mxu1 %v4463_v1 }
 0x15e   :  { %4037 = vmatpush3.bf16.msra.mxu0 %v5268_v40 }
 0x15f   :  { %4057 = vmatpush3.bf16.msra.mxu1 %v5275_v41  ;;  %4062 = vmatprep.subr.bf16.mxu0 %v4463_v1 }
 0x160   :  { %4082 = vmatprep.subr.bf16.mxu1 %v4463_v1 }
 0x161   :  { %4039 = vmatmul.mubr.bf16.vlgmr.msra.gmra.mrb[40].mxu0 %v5096_v5 }
 0x162   :  { %4059 = vmatmul.mubr.bf16.vlgmr.msra.gmra.mrb[40].mxu1 %v5096_v5  ;;  %4063 = vmatpush3.bf16.msra.mxu0 %v5282_v42 }
 0x163   :  { %4083 = vmatpush3.bf16.msra.mxu1 %v5289_v43  ;;  %4064 = vmatprep.subr.bf16.mxu0 %v4463_v1 }
 0x164   :  { %4084 = vmatprep.subr.bf16.mxu1 %v4463_v1  ;;  %4078 = vmatprep.mubr.msk.bf16.mxu0 %vm4464_vm0, %v4463_v1 }
 0x165   :  { %4098 = vmatprep.mubr.msk.bf16.mxu1 %vm4464_vm0, %v4463_v1 }
 0x166   :  { %4065 = vmatpush3.bf16.msra.mxu0 %v5298_v44 }
 0x167   :  { %4085 = vmatpush3.bf16.msra.mxu1 %v5305_v45  ;;  %4066 = vmatprep.subr.bf16.mxu0 %v4463_v1 }
 0x168   :  { %4086 = vmatprep.subr.bf16.mxu1 %v4463_v1 }
 0x16a   :  { %4067 = vmatpush3.bf16.msra.mxu0 %v5316_v46 }
 0x16b   :  { %4087 = vmatpush3.bf16.msra.mxu1 %v5323_v47  ;;  %4068 = vmatprep.subr.bf16.mxu0 %v4463_v1 }
 0x16c   :  { %4088 = vmatprep.subr.bf16.mxu1 %v4463_v1 }
 0x16e   :  { %4069 = vmatpush3.bf16.msra.mxu0 %v5330_v48 }
 0x16f   :  { %4089 = vmatpush3.bf16.msra.mxu1 %v5337_v49  ;;  %4070 = vmatprep.subr.bf16.mxu0 %v4463_v1 }
 0x170   :  { %4090 = vmatprep.subr.bf16.mxu1 %v4463_v1 }
 0x172   :  { %4071 = vmatpush3.bf16.msra.mxu0 %v5344_v50 }
 0x173   :  { %4091 = vmatpush3.bf16.msra.mxu1 %v5351_v52  ;;  %4072 = vmatprep.subr.bf16.mxu0 %v4463_v1 }
 0x174   :  { %v864_v22 = vpop.f32.mrb[16].mxu0  ;;  %4092 = vmatprep.subr.bf16.mxu1 %v4463_v1 }
 0x175   :  { %v3800_v23 = vpop.f32.mrb[17].mxu0  ;;  %v953_v24 = vpop.f32.mrb[16].mxu1 }
 0x176   :  { %v867_v25 = vpop.f32.mrb[18].mxu0  ;;  %4073 = vmatpush3.bf16.msra.mxu0 %v5358_v53  ;;  %v3820_v26 = vpop.f32.mrb[17].mxu1 }
 0x177   :  { %v1836_v27 = vpack.c.bf16 %v867_v25, %v864_v22  ;;  %4093 = vmatpush3.bf16.msra.mxu1 %v5365_v54  ;;  %v3801_v29 = vpop.f32.mrb[19].mxu0  ;;  %v956_v32 = vpop.f32.mrb[18].mxu1  ;;  %4074 = vmatprep.subr.bf16.mxu0 %v4463_v1 }
 0x178   :  { %v1837_v33 = vpack.c.bf16 %v956_v32, %v953_v24  ;;  %v3821_v35 = vpop.f32.mrb[19].mxu1  ;;  %4094 = vmatprep.subr.bf16.mxu1 %v4463_v1 }
 0x179   :  { %v1849_v37 = vsel %vm1844_vm1, %v1836_v27, 0 }
 0x17a   :  { %4075 = vmatpush3.bf16.msra.mxu0 %v5378_v60  ;;  %v1896_v39 = vsel %vm1844_vm1, %v1837_v33, 0 }
 0x17b   :  { %4095 = vmatpush3.bf16.msra.mxu1 %v5389_v0  ;;  %4076 = vmatprep.subr.bf16.mxu0 %v4463_v1 }
 0x17c   :  { %4096 = vmatprep.subr.bf16.mxu1 %v4463_v1 }
 0x17e   :  { %4077 = vmatpush3.bf16.msra.mxu0 %v5398_v4 }
 0x17f   :  { %4097 = vmatpush3.bf16.msra.mxu1 %v5405_v7  ;;  %4102 = vmatprep.subr.bf16.mxu0 %v4463_v1 }
 0x180   :  { %4108 = vmatprep.subr.bf16.mxu1 %v4463_v1 }
 0x181   :  { %4079 = vmatmul.mubr.bf16.vlgmr.msra.gmra.mrb[44].mxu0 %v5096_v5 }
 0x182   :  { %4099 = vmatmul.mubr.bf16.vlgmr.msra.gmra.mrb[44].mxu1 %v5096_v5  ;;  %4104 = vmatprep.mubr.msk.bf16.mxu0 %vm4464_vm0, %v4463_v1 }
 0x183   :  { %4110 = vmatprep.mubr.msk.bf16.mxu1 %vm4464_vm0, %v4463_v1 }
 0x187   :  { %4103 = vmatpush3.bf16.xpose.msra.mxu0 %v1849_v37 }
 0x188   :  { %4109 = vmatpush3.bf16.xpose.msra.mxu1 %v1896_v39  ;;  %4114 = vmatprep.subr.bf16.mxu0 %v4463_v1 }
 0x189   :  { %4120 = vmatprep.subr.bf16.mxu1 %v4463_v1 }
 0x18e   :  { %4105 = vmatmul.mubr.msk.bf16.vlgmr.msra.gmra.mrb[48].mxu0 %vm1844_vm1, %v1828_v11 }
 0x18f   :  { %4111 = vmatmul.mubr.msk.bf16.vlgmr.msra.gmra.mrb[48].mxu1 %vm1844_vm1, %v1829_v14  ;;  %4116 = vmatprep.mubr.msk.bf16.mxu0 %vm4464_vm0, %v4463_v1 }
 0x190   :  { %4122 = vmatprep.mubr.msk.bf16.mxu1 %vm4464_vm0, %v4463_v1 }
 0x194   :  { %v1042_v5 = vpop.f32.mrb[20].mxu0 }
 0x195   :  { %v1131_v40 = vpop.f32.mrb[20].mxu1  ;;  %v3840_v41 = vpop.f32.mrb[21].mxu0 }
 0x196   :  { %v3860_v42 = vpop.f32.mrb[21].mxu1  ;;  %v1045_v43 = vpop.f32.mrb[22].mxu0 }
 0x197   :  { %v1838_v44 = vpack.c.bf16 %v1045_v43, %v1042_v5  ;;  %v1134_v6 = vpop.f32.mrb[22].mxu1  ;;  %v3841_v9 = vpop.f32.mrb[23].mxu0 }
 0x198   :  { %v1839_v11 = vpack.c.bf16 %v1134_v6, %v1131_v40  ;;  %v3861_v45 = vpop.f32.mrb[23].mxu1 }
 0x199   :  { %v1943_v8 = vsel %vm1844_vm1, %v1838_v44, 0 }
 0x19a   :  { %v1990_v13 = vsel %vm1844_vm1, %v1839_v11, 0  ;;  %4115 = vmatpush3.bf16.xpose.msra.mxu0 %v1943_v8 }
 0x19b   :  { %4121 = vmatpush3.bf16.xpose.msra.mxu1 %v1990_v13  ;;  %4126 = vmatprep.subr.bf16.mxu0 %v4463_v1 }
 0x19c   :  { %4132 = vmatprep.subr.bf16.mxu1 %v4463_v1 }
 0x1a1   :  { %4117 = vmatmul.mubr.msk.bf16.vlgmr.msra.gmra.mrb[52].mxu0 %vm1844_vm1, %v1830_v34 }
 0x1a2   :  { %4123 = vmatmul.mubr.msk.bf16.vlgmr.msra.gmra.mrb[52].mxu1 %vm1844_vm1, %v1831_v38  ;;  %4128 = vmatprep.mubr.msk.bf16.mxu0 %vm4464_vm0, %v4463_v1 }
 0x1a3   :  { %4134 = vmatprep.mubr.msk.bf16.mxu1 %vm4464_vm0, %v4463_v1 }
 0x1b4   :  { %v1178_v14 = vpop.f32.mrb[24].mxu0 }
 0x1b5   :  { %v1219_v46 = vpop.f32.mrb[24].mxu1  ;;  %v3880_v47 = vpop.f32.mrb[25].mxu0 }
 0x1b6   :  { %v3900_v48 = vpop.f32.mrb[25].mxu1  ;;  %v1181_v49 = vpop.f32.mrb[26].mxu0 }
 0x1b7   :  { %v1840_v50 = vpack.c.bf16 %v1181_v49, %v1178_v14  ;;  %v1222_v28 = vpop.f32.mrb[26].mxu1  ;;  %v3881_v31 = vpop.f32.mrb[27].mxu0 }
 0x1b8   :  { %v1841_v34 = vpack.c.bf16 %v1222_v28, %v1219_v46  ;;  %v3901_v52 = vpop.f32.mrb[27].mxu1 }
 0x1b9   :  { %v2037_v30 = vsel %vm1844_vm1, %v1840_v50, 0 }
 0x1ba   :  { %v2084_v36 = vsel %vm1844_vm1, %v1841_v34, 0  ;;  %4127 = vmatpush3.bf16.xpose.msra.mxu0 %v2037_v30 }
 0x1bb   :  { %4133 = vmatpush3.bf16.xpose.msra.mxu1 %v2084_v36  ;;  %4138 = vmatprep.subr.bf16.mxu0 %v4463_v1 }
 0x1bc   :  { %4144 = vmatprep.subr.bf16.mxu1 %v4463_v1 }
 0x1c1   :  { %4129 = vmatmul.mubr.msk.bf16.vlgmr.msra.gmra.mrb[56].mxu0 %vm1844_vm1, %v1832_v61 }
 0x1c2   :  { %4135 = vmatmul.mubr.msk.bf16.vlgmr.msra.gmra.mrb[56].mxu1 %vm1844_vm1, %v1833_v2  ;;  %4140 = vmatprep.mubr.msk.bf16.mxu0 %vm4464_vm0, %v4463_v1 }
 0x1c3   :  { %4146 = vmatprep.mubr.msk.bf16.mxu1 %vm4464_vm0, %v4463_v1 }
 0x1d4   :  { %v1260_v38 = vpop.f32.mrb[28].mxu0 }
 0x1d5   :  { %v1301_v53 = vpop.f32.mrb[28].mxu1  ;;  %v3920_v54 = vpop.f32.mrb[29].mxu0 }
 0x1d6   :  { %v3940_v56 = vpop.f32.mrb[29].mxu1  ;;  %v1263_v59 = vpop.f32.mrb[30].mxu0 }
 0x1d7   :  { %v1842_v60 = vpack.c.bf16 %v1263_v59, %v1260_v38  ;;  %v1304_v55 = vpop.f32.mrb[30].mxu1  ;;  %v3921_v58 = vpop.f32.mrb[31].mxu0 }
 0x1d8   :  { %v1843_v61 = vpack.c.bf16 %v1304_v55, %v1301_v53  ;;  %v3941_v62 = vpop.f32.mrb[31].mxu1 }
 0x1d9   :  { %v2131_v57 = vsel %vm1844_vm1, %v1842_v60, 0 }
 0x1da   :  { %v2178_v63 = vsel %vm1844_vm1, %v1843_v61, 0  ;;  %4139 = vmatpush3.bf16.xpose.msra.mxu0 %v2131_v57 }
 0x1db   :  { %4145 = vmatpush3.bf16.xpose.msra.mxu1 %v2178_v63  ;;  %4150 = vmatprep.subr.bf16.mxu0 %v4463_v1 }
 0x1dc   :  { %4156 = vmatprep.subr.bf16.mxu1 %v4463_v1 }
 0x1e1   :  { %4141 = vmatmul.mubr.msk.bf16.vlgmr.msra.gmra.mrb[60].mxu0 %vm1844_vm1, %v1834_v17 }
 0x1e2   :  { %4147 = vmatmul.mubr.msk.bf16.vlgmr.msra.gmra.mrb[60].mxu1 %vm1844_vm1, %v1835_v20  ;;  %4152 = vmatprep.mubr.msk.bf16.mxu0 %vm4464_vm0, %v4463_v1 }
 0x1e3   :  { %4158 = vmatprep.mubr.msk.bf16.mxu1 %vm4464_vm0, %v4463_v1 }
 0x1f4   :  { %v1390_v0 = vpop.f32.mrb[32].mxu0 }
 0x1f5   :  { %v3960_v2 = vpop.f32.mrb[33].mxu0  ;;  %v1479_v3 = vpop.f32.mrb[32].mxu1 }
 0x1f6   :  { %v1393_v4 = vpop.f32.mrb[34].mxu0  ;;  %v3980_v7 = vpop.f32.mrb[33].mxu1 }
 0x1f7   :  { %v2406_v10 = vpack.c.bf16 %v1393_v4, %v1390_v0  ;;  %v3961_v51 = vpop.f32.mrb[35].mxu0  ;;  %v1482_v15 = vpop.f32.mrb[34].mxu1 }
 0x1f8   :  { %v2407_v16 = vpack.c.bf16 %v1482_v15, %v1479_v3  ;;  %v3981_v17 = vpop.f32.mrb[35].mxu1 }
 0x1f9   :  { %4151 = vmatpush3.bf16.msra.mxu0 %v2406_v10 }
 0x1fa   :  { %4157 = vmatpush3.bf16.msra.mxu1 %v2407_v16  ;;  %4162 = vmatprep.subr.bf16.mxu0 %v4463_v1 }
 0x1fb   :  { %4168 = vmatprep.subr.bf16.mxu1 %v4463_v1 }
 0x214   :  { %v5572_v12 = vpop.f32.mrb[36].mxu0 }
 0x215   :  { %v4000_v18 = vpop.f32.mrb[37].mxu0  ;;  %v5574_v19 = vpop.f32.mrb[36].mxu1 }
 0x216   :  { %v5576_v20 = vpop.f32.mrb[38].mxu0  ;;  %v4020_v21 = vpop.f32.mrb[37].mxu1 }
 0x217   :  { %v2408_v22 = vpack.c.bf16 %v5576_v20, %v5572_v12  ;;  %v4001_v23 = vpop.f32.mrb[39].mxu0  ;;  %v5580_v24 = vpop.f32.mrb[38].mxu1 }
 0x218   :  { %v2409_v25 = vpack.c.bf16 %v5580_v24, %v5574_v19  ;;  %v4021_v26 = vpop.f32.mrb[39].mxu1 }
 0x234   :  { %v5584_v27 = vpop.f32.mrb[40].mxu0 }
 0x235   :  { %v5586_v29 = vpop.f32.mrb[40].mxu1  ;;  %v4040_v32 = vpop.f32.mrb[41].mxu0 }
 0x236   :  { %v4060_v33 = vpop.f32.mrb[41].mxu1  ;;  %v5588_v35 = vpop.f32.mrb[42].mxu0 }
 0x237   :  { %v2410_v37 = vpack.c.bf16 %v5588_v35, %v5584_v27  ;;  %v5592_v39 = vpop.f32.mrb[42].mxu1  ;;  %v4041_v5 = vpop.f32.mrb[43].mxu0 }
 0x238   :  { %v2411_v40 = vpack.c.bf16 %v5592_v39, %v5586_v29  ;;  %v4061_v41 = vpop.f32.mrb[43].mxu1 }
 0x254   :  { %v5596_v42 = vpop.f32.mrb[44].mxu0 }
 0x255   :  { %v5598_v43 = vpop.f32.mrb[44].mxu1  ;;  %v4080_v44 = vpop.f32.mrb[45].mxu0 }
 0x256   :  { %v4100_v6 = vpop.f32.mrb[45].mxu1  ;;  %v5600_v9 = vpop.f32.mrb[46].mxu0 }
 0x257   :  { %v2412_v11 = vpack.c.bf16 %v5600_v9, %v5596_v42  ;;  %v5604_v45 = vpop.f32.mrb[46].mxu1  ;;  %v4081_v8 = vpop.f32.mrb[47].mxu0 }
 0x258   :  { %v2413_v13 = vpack.c.bf16 %v5604_v45, %v5598_v43  ;;  %v4101_v14 = vpop.f32.mrb[47].mxu1 }
 0x261   :  { %v5608_v46 = vpop.f32.mrb[48].mxu0 }
 0x262   :  { %v5610_v47 = vpop.f32.mrb[48].mxu1  ;;  %v4106_v48 = vpop.f32.mrb[49].mxu0  ;;  %v2222_v49 = vsel %vm2221_vm2, %v5608_v46, -inf }
 0x263   :  { %v4112_v50 = vpop.f32.mrb[49].mxu1  ;;  %v2228_v28 = vsel %vm2221_vm2, %v5610_v47, -inf  ;;  %2223 = vmax.xlane.f32.xlu0 %v2222_v49  ;;  %v5616_v31 = vpop.f32.mrb[50].mxu0 }
 0x264   :  { %2229 = vmax.xlane.f32.xlu1 %v2228_v28  ;;  %v5618_v34 = vpop.f32.mrb[50].mxu1  ;;  %v4107_v52 = vpop.f32.mrb[51].mxu0  ;;  %v2225_v36 = vsel %vm2221_vm2, %v5616_v31, -inf }
 0x265   :  { %v4113_v30 = vpop.f32.mrb[51].mxu1  ;;  %v2231_v38 = vsel %vm2221_vm2, %v5618_v34, -inf }
 0x267   :  { %2226 = vmax.xlane.f32.xlu0 %v2225_v36 }
 0x268   :  { %2232 = vmax.xlane.f32.xlu1 %v2231_v38 }
 0x274   :  { %v5624_v53 = vpop.f32.mrb[52].mxu0 }
 0x275   :  { %v5626_v54 = vpop.f32.mrb[52].mxu1  ;;  %v4118_v56 = vpop.f32.mrb[53].mxu0  ;;  %v2234_v59 = vsel %vm2221_vm2, %v5624_v53, -inf }
 0x276   :  { %v4124_v60 = vpop.f32.mrb[53].mxu1  ;;  %2235 = vmax.xlane.f32.xlu0 %v2234_v59  ;;  %v5630_v55 = vpop.f32.mrb[54].mxu0  ;;  %v2240_v63 = vsel %vm2221_vm2, %v5626_v54, -inf }
 0x277   :  { %v5632_v58 = vpop.f32.mrb[54].mxu1  ;;  %v4119_v61 = vpop.f32.mrb[55].mxu0  ;;  %v2237_v62 = vsel %vm2221_vm2, %v5630_v55, -inf }
 0x278   :  { %v4125_v57 = vpop.f32.mrb[55].mxu1  ;;  %2238 = vmax.xlane.f32.xlu1 %v2237_v62  ;;  %v2243_v0 = vsel %vm2221_vm2, %v5632_v58, -inf }
 0x27a   :  { %2241 = vmax.xlane.f32.xlu0 %v2240_v63 }
 0x27c   :  { %2244 = vmax.xlane.f32.xlu1 %v2243_v0 }
 0x294   :  { %v5640_v2 = vpop.f32.mrb[56].mxu0 }
 0x295   :  { %v5642_v3 = vpop.f32.mrb[56].mxu1  ;;  %v4130_v4 = vpop.f32.mrb[57].mxu0  ;;  %v2246_v7 = vsel %vm2221_vm2, %v5640_v2, -inf }
 0x296   :  { %v4136_v10 = vpop.f32.mrb[57].mxu1  ;;  %2247 = vmax.xlane.f32.xlu0 %v2246_v7  ;;  %v5646_v51 = vpop.f32.mrb[58].mxu0  ;;  %v2252_v21 = vsel %vm2221_vm2, %v5642_v3, -inf }
 0x297   :  { %v5648_v15 = vpop.f32.mrb[58].mxu1  ;;  %v4131_v16 = vpop.f32.mrb[59].mxu0  ;;  %v2249_v17 = vsel %vm2221_vm2, %v5646_v51, -inf }
 0x298   :  { %v4137_v18 = vpop.f32.mrb[59].mxu1  ;;  %2250 = vmax.xlane.f32.xlu1 %v2249_v17  ;;  %v2255_v23 = vsel %vm2221_vm2, %v5648_v15, -inf }
 0x29a   :  { %2253 = vmax.xlane.f32.xlu0 %v2252_v21 }
 0x29c   :  { %2256 = vmax.xlane.f32.xlu1 %v2255_v23 }
 0x2b4   :  { %v5656_v26 = vpop.f32.mrb[60].mxu0 }
 0x2b5   :  { %v5658_v32 = vpop.f32.mrb[60].mxu1  ;;  %v4142_v33 = vpop.f32.mrb[61].mxu0  ;;  %v2258_v5 = vsel %vm2221_vm2, %v5656_v26, -inf }
 0x2b6   :  { %v4148_v41 = vpop.f32.mrb[61].mxu1  ;;  %2259 = vmax.xlane.f32.xlu0 %v2258_v5  ;;  %v5662_v44 = vpop.f32.mrb[62].mxu0  ;;  %v2264_v49 = vsel %vm2221_vm2, %v5658_v32, -inf }
 0x2b7   :  { %v5664_v6 = vpop.f32.mrb[62].mxu1  ;;  %v4143_v8 = vpop.f32.mrb[63].mxu0  ;;  %v2261_v14 = vsel %vm2221_vm2, %v5662_v44, -inf }
 0x2b8   :  { %v4149_v48 = vpop.f32.mrb[63].mxu1  ;;  %2262 = vmax.xlane.f32.xlu1 %v2261_v14  ;;  %v2267_v50 = vsel %vm2221_vm2, %v5664_v6, -inf }
 0x2ba   :  { %2265 = vmax.xlane.f32.xlu0 %v2264_v49 }
 0x2bc   :  { %2268 = vmax.xlane.f32.xlu1 %v2267_v50 }
 0x2f0   :  { %v2224_v28 = vpop.xlane.xlu0 %2223 }
 0x2f1   :  { %v2230_v52 = vpop.xlane.xlu1 %2229  ;;  %v2270_v30 = vsub.f32 %v5608_v46, %v2224_v28 }
 0x2f2   :  { %v2272_v36 = vsub.f32 %v5610_v47, %v2230_v52 }
 0x2f3   :  { %v2286_v38 = vmul.f32 1.442695, %v2270_v30 }
 0x2f4   :  { %v2290_v56 = vmul.f32 1.442695, %v2272_v36  ;;  %v2227_v59 = vpop.xlane.xlu0 %2226 }
 0x2f5   :  { %4375 = vpow2.f32 %v2286_v38  ;;  %v2233_v60 = vpop.xlane.xlu1 %2232  ;;  %v2271_v61 = vsub.f32 %v5616_v31, %v2227_v59 }
 0x2f6   :  { %v2273_v62 = vsub.f32 %v5618_v34, %v2233_v60  ;;  %4377 = vpow2.f32 %v2290_v56 }
 0x2f7   :  { %v2288_v57 = vmul.f32 1.442695, %v2271_v61 }
 0x2f8   :  { %v2292_v63 = vmul.f32 1.442695, %v2273_v62 }
 0x2f9   :  { %4379 = vpow2.f32 %v2288_v57 }
 0x2fa   :  { %4381 = vpow2.f32 %v2292_v63 }
 0x2ff   :  { %v5676_v0 = vpop.eup %4375 }
 0x300   :  { %v2318_v46 = vsel %vm2221_vm2, %v5676_v0, 0.0  ;;  %v5680_v47 = vpop.eup %4377 }
 0x301   :  { %2319 = vadd.xlane.f32.xlu0 %v2318_v46  ;;  %v2324_v34 = vsel %vm2221_vm2, %v5680_v47, 0.0 }
 0x303   :  { %v5682_v4 = vpop.eup %4379  ;;  %v2236_v7 = vpop.xlane.xlu0 %2235 }
 0x304   :  { %v2274_v31 = vsub.f32 %v5624_v53, %v2236_v7  ;;  %v2321_v10 = vsel %vm2221_vm2, %v5682_v4, 0.0  ;;  %v5689_v16 = vpop.eup %4381 }
 0x305   :  { %v2239_v17 = vpop.xlane.xlu1 %2238  ;;  %2325 = vadd.xlane.f32.xlu0 %v2324_v34  ;;  %2322 = vadd.xlane.f32.xlu1 %v2321_v10  ;;  %v2327_v53 = vsel %vm2221_vm2, %v5689_v16, 0.0 }
 0x306   :  { %v2294_v18 = vmul.f32 1.442695, %v2274_v31  ;;  %v2275_v21 = vsub.f32 %v5630_v55, %v2239_v17 }
 0x307   :  { %v2242_v23 = vpop.xlane.xlu0 %2241 }
 0x308   :  { %4383 = vpow2.f32 %v2294_v18  ;;  %v2296_v33 = vmul.f32 1.442695, %v2275_v21  ;;  %v2276_v5 = vsub.f32 %v5626_v54, %v2242_v23 }
 0x309   :  { %v2245_v41 = vpop.xlane.xlu1 %2244  ;;  %2328 = vadd.xlane.f32.xlu1 %v2327_v53 }
 0x30a   :  { %4385 = vpow2.f32 %v2296_v33  ;;  %v2298_v8 = vmul.f32 1.442695, %v2276_v5  ;;  %v2277_v14 = vsub.f32 %v5632_v58, %v2245_v41 }
 0x30c   :  { %4387 = vpow2.f32 %v2298_v8  ;;  %v2300_v48 = vmul.f32 1.442695, %v2277_v14 }
 0x30e   :  { %4389 = vpow2.f32 %v2300_v48 }
 0x312   :  { %v5696_v49 = vpop.eup %4383 }
 0x313   :  { %v2330_v55 = vsel %vm2221_vm2, %v5696_v49, 0.0 }
 0x314   :  { %v5700_v50 = vpop.eup %4385  ;;  %2331 = vadd.xlane.f32.xlu0 %v2330_v55 }
 0x315   :  { %v2333_v54 = vsel %vm2221_vm2, %v5700_v50, 0.0 }
 0x316   :  { %v5704_v28 = vpop.eup %4387  ;;  %2334 = vadd.xlane.f32.xlu1 %v2333_v54 }
 0x317   :  { %v2336_v58 = vsel %vm2221_vm2, %v5704_v28, 0.0 }
 0x318   :  { %v5708_v52 = vpop.eup %4389  ;;  %2337 = vadd.xlane.f32.xlu0 %v2336_v58 }
 0x319   :  { %v2339_v30 = vsel %vm2221_vm2, %v5708_v52, 0.0 }
 0x31a   :  { %2340 = vadd.xlane.f32.xlu1 %v2339_v30 }
 0x323   :  { %v2248_v36 = vpop.xlane.xlu0 %2247 }
 0x324   :  { %v2278_v38 = vsub.f32 %v5640_v2, %v2248_v36 }
 0x325   :  { %v2251_v56 = vpop.xlane.xlu1 %2250 }
 0x326   :  { %v2302_v59 = vmul.f32 1.442695, %v2278_v38  ;;  %v2279_v60 = vsub.f32 %v5646_v51, %v2251_v56 }
 0x327   :  { %v2254_v61 = vpop.xlane.xlu0 %2253 }
 0x328   :  { %4391 = vpow2.f32 %v2302_v59  ;;  %v2304_v62 = vmul.f32 1.442695, %v2279_v60  ;;  %v2280_v57 = vsub.f32 %v5642_v3, %v2254_v61 }
 0x329   :  { %v2257_v63 = vpop.xlane.xlu1 %2256 }
 0x32a   :  { %4393 = vpow2.f32 %v2304_v62  ;;  %v2306_v46 = vmul.f32 1.442695, %v2280_v57  ;;  %v2281_v7 = vsub.f32 %v5648_v15, %v2257_v63 }
 0x32c   :  { %4395 = vpow2.f32 %v2306_v46  ;;  %v2308_v31 = vmul.f32 1.442695, %v2281_v7 }
 0x32e   :  { %4397 = vpow2.f32 %v2308_v31 }
 0x332   :  { %v5716_v34 = vpop.eup %4391 }
 0x333   :  { %v2342_v2 = vsel %vm2221_vm2, %v5716_v34, 0.0 }
 0x334   :  { %v5720_v10 = vpop.eup %4393  ;;  %2343 = vadd.xlane.f32.xlu0 %v2342_v2 }
 0x335   :  { %v2345_v51 = vsel %vm2221_vm2, %v5720_v10, 0.0 }
 0x336   :  { %v5724_v3 = vpop.eup %4395  ;;  %2346 = vadd.xlane.f32.xlu1 %v2345_v51 }
 0x337   :  { %v2348_v15 = vsel %vm2221_vm2, %v5724_v3, 0.0 }
 0x338   :  { %v5728_v17 = vpop.eup %4397  ;;  %2349 = vadd.xlane.f32.xlu0 %v2348_v15 }
 0x339   :  { %v2351_v18 = vsel %vm2221_vm2, %v5728_v17, 0.0 }
 0x33a   :  { %2352 = vadd.xlane.f32.xlu1 %v2351_v18 }
 0x343   :  { %v2260_v21 = vpop.xlane.xlu0 %2259 }
 0x344   :  { %v2282_v23 = vsub.f32 %v5656_v26, %v2260_v21 }
 0x345   :  { %v2263_v33 = vpop.xlane.xlu1 %2262 }
 0x346   :  { %v2310_v5 = vmul.f32 1.442695, %v2282_v23  ;;  %v2283_v53 = vsub.f32 %v5662_v44, %v2263_v33 }
 0x347   :  { %v2266_v41 = vpop.xlane.xlu0 %2265 }
 0x348   :  { %4399 = vpow2.f32 %v2310_v5  ;;  %v2312_v8 = vmul.f32 1.442695, %v2283_v53  ;;  %v2284_v14 = vsub.f32 %v5658_v32, %v2266_v41 }
 0x349   :  { %v2269_v48 = vpop.xlane.xlu1 %2268 }
 0x34a   :  { %4401 = vpow2.f32 %v2312_v8  ;;  %v2314_v55 = vmul.f32 1.442695, %v2284_v14  ;;  %v2285_v54 = vsub.f32 %v5664_v6, %v2269_v48 }
 0x34c   :  { %4403 = vpow2.f32 %v2314_v55  ;;  %v2316_v58 = vmul.f32 1.442695, %v2285_v54 }
 0x34e   :  { %4405 = vpow2.f32 %v2316_v58 }
 0x352   :  { %v5736_v30 = vpop.eup %4399 }
 0x353   :  { %v2354_v26 = vsel %vm2221_vm2, %v5736_v30, 0.0 }
 0x354   :  { %v5740_v36 = vpop.eup %4401  ;;  %2355 = vadd.xlane.f32.xlu0 %v2354_v26 }
 0x355   :  { %v2357_v44 = vsel %vm2221_vm2, %v5740_v36, 0.0 }
 0x356   :  { %v5744_v32 = vpop.eup %4403  ;;  %2358 = vadd.xlane.f32.xlu1 %v2357_v44  ;;  %v4369_v44 = vld [vmem:[%s5894_s5 + $0x10] sm:$0xff]  }
 0x357   :  { %v2360_v6 = vsel %vm2221_vm2, %v5744_v32, 0.0 }
 0x358   :  { %v5748_v38 = vpop.eup %4405  ;;  %2361 = vadd.xlane.f32.xlu0 %v2360_v6 }
 0x359   :  { %v2363_v56 = vsel %vm2221_vm2, %v5748_v38, 0.0 }
 0x35a   :  { %2364 = vadd.xlane.f32.xlu1 %v2363_v56 }
 0x38e   :  { %v2320_v59 = vpop.xlane.xlu0 %2319 }
 0x38f   :  { %4407 = vrcp.f32 %v2320_v59  ;;  %v4371_v59 = vld [vmem:[%s5894_s5 + $0x20] sm:$0xff]  }
 0x392   :  { %v2326_v60 = vpop.xlane.xlu0 %2325  ;;  %v2323_v61 = vpop.xlane.xlu1 %2322 }
 0x393   :  { %4409 = vrcp.f32 %v2323_v61 }
 0x394   :  { %4411 = vrcp.f32 %v2326_v60 }
 0x396   :  { %v2329_v62 = vpop.xlane.xlu1 %2328 }
 0x397   :  { %4413 = vrcp.f32 %v2329_v62 }
 0x399   :  { %v4408_v57 = vpop.eup %4407 }
 0x39a   :  { %v2382_v7 = vmul.f32 %v4408_v57, %v5676_v0 }
 0x39d   :  { %v4410_v63 = vpop.eup %4409 }
 0x39e   :  { %v4412_v46 = vpop.eup %4411  ;;  %v2383_v31 = vmul.f32 %v4410_v63, %v5682_v4 }
 0x39f   :  { %v2384_v18 = vmul.f32 %v4412_v46, %v5680_v47  ;;  %v4373_v46 = vld [vmem:[%s5894_s5 + $0x30] sm:$0xff]  }
 0x3a0   :  { %v2398_v15 = vpack.c.bf16 %v2383_v31, %v2382_v7 }
 0x3a1   :  { %v4414_v2 = vpop.eup %4413  ;;  %v2332_v51 = vpop.xlane.xlu0 %2331 }
 0x3a2   :  { %v2385_v21 = vmul.f32 %v4414_v2, %v5689_v16  ;;  %4415 = vrcp.f32 %v2332_v51  ;;  %4153 = vmatmul.mubr.msk.bf16.vlgmr.msra.gmra.mrb[64].mxu0 %vm2221_vm2, %v2398_v15  ;;  %v4372_v2 = vld [vmem:[%s5894_s5 + $0x28] sm:$0xff]   ;;  %v4374_v51 = vld [vmem:[%s5894_s5 + $0x38] sm:$0xff]  }
 0x3a3   :  { %v2335_v23 = vpop.xlane.xlu1 %2334  ;;  %4163 = vmatpush3.bf16.msra.mxu0 %v2408_v22  ;;  %4164 = vmatprep.mubr.msk.bf16.mxu0 %vm4464_vm0, %v4463_v1 }
 0x3a4   :  { %4417 = vrcp.f32 %v2335_v23  ;;  %v2399_v33 = vpack.c.bf16 %v2385_v21, %v2384_v18  ;;  %4174 = vmatprep.subr.bf16.mxu0 %v4463_v1 }
 0x3a5   :  { %v2338_v0 = vpop.xlane.xlu0 %2337 }
 0x3a6   :  { %4419 = vrcp.f32 %v2338_v0  ;;  %4159 = vmatmul.mubr.msk.bf16.vlgmr.msra.gmra.mrb[64].mxu1 %vm2221_vm2, %v2399_v33 }
 0x3a7   :  { %4169 = vmatpush3.bf16.msra.mxu1 %v2409_v25  ;;  %v2341_v47 = vpop.xlane.xlu1 %2340  ;;  %4170 = vmatprep.mubr.msk.bf16.mxu1 %vm4464_vm0, %v4463_v1 }
 0x3a8   :  { %4421 = vrcp.f32 %v2341_v47  ;;  %4180 = vmatprep.subr.bf16.mxu1 %v4463_v1 }
 0x3ac   :  { %v4416_v12 = vpop.eup %4415 }
 0x3ad   :  { %v2386_v22 = vmul.f32 %v4416_v12, %v5696_v49 }
 0x3ae   :  { %v4418_v20 = vpop.eup %4417 }
 0x3af   :  { %v2387_v4 = vmul.f32 %v4418_v20, %v5700_v50 }
 0x3b0   :  { %v4420_v16 = vpop.eup %4419 }
 0x3b1   :  { %v2400_v5 = vpack.c.bf16 %v2387_v4, %v2386_v22  ;;  %v2388_v41 = vmul.f32 %v4420_v16, %v5704_v28 }
 0x3b2   :  { %v4422_v53 = vpop.eup %4421 }
 0x3b3   :  { %v2389_v19 = vmul.f32 %v4422_v53, %v5708_v52  ;;  %4165 = vmatmul.mubr.msk.bf16.vlgmr.msra.gmra.mrb[68].mxu0 %vm2221_vm2, %v2400_v5 }
 0x3b4   :  { %4175 = vmatpush3.bf16.msra.mxu0 %v2410_v37  ;;  %4176 = vmatprep.mubr.msk.bf16.mxu0 %vm4464_vm0, %v4463_v1 }
 0x3b5   :  { %v2401_v24 = vpack.c.bf16 %v2389_v19, %v2388_v41  ;;  %4186 = vmatprep.subr.bf16.mxu0 %v4463_v1 }
 0x3b7   :  { %4171 = vmatmul.mubr.msk.bf16.vlgmr.msra.gmra.mrb[68].mxu1 %vm2221_vm2, %v2401_v24 }
 0x3b8   :  { %4181 = vmatpush3.bf16.msra.mxu1 %v2411_v40  ;;  %4182 = vmatprep.mubr.msk.bf16.mxu1 %vm4464_vm0, %v4463_v1 }
 0x3b9   :  { %4192 = vmatprep.subr.bf16.mxu1 %v4463_v1 }
 0x3c1   :  { %v2344_v25 = vpop.xlane.xlu0 %2343 }
 0x3c2   :  { %4423 = vrcp.f32 %v2344_v25 }
 0x3c3   :  { %v2347_v27 = vpop.xlane.xlu1 %2346 }
 0x3c4   :  { %4425 = vrcp.f32 %v2347_v27 }
 0x3c5   :  { %v2350_v35 = vpop.xlane.xlu0 %2349 }
 0x3c6   :  { %4427 = vrcp.f32 %v2350_v35 }
 0x3c7   :  { %v2353_v37 = vpop.xlane.xlu1 %2352 }
 0x3c8   :  { %4429 = vrcp.f32 %v2353_v37 }
 0x3cc   :  { %v4424_v49 = vpop.eup %4423 }
 0x3cd   :  { %v2390_v28 = vmul.f32 %v4424_v49, %v5716_v34 }
 0x3ce   :  { %v4426_v50 = vpop.eup %4425 }
 0x3cf   :  { %v2391_v29 = vmul.f32 %v4426_v50, %v5720_v10 }
 0x3d0   :  { %v4428_v39 = vpop.eup %4427 }
 0x3d1   :  { %v2402_v40 = vpack.c.bf16 %v2391_v29, %v2390_v28  ;;  %v2392_v8 = vmul.f32 %v4428_v39, %v5724_v3 }
 0x3d2   :  { %v4430_v52 = vpop.eup %4429 }
 0x3d3   :  { %v2393_v14 = vmul.f32 %v4430_v52, %v5728_v17  ;;  %4177 = vmatmul.mubr.msk.bf16.vlgmr.msra.gmra.mrb[72].mxu0 %vm2221_vm2, %v2402_v40 }
 0x3d4   :  { %4187 = vmatpush3.bf16.msra.mxu0 %v2412_v11  ;;  %4188 = vmatprep.mubr.msk.bf16.mxu0 %vm4464_vm0, %v4463_v1 }
 0x3d5   :  { %v2403_v48 = vpack.c.bf16 %v2393_v14, %v2392_v8  ;;  %4198 = vmatprep.subr.bf16.mxu0 %v4463_v1 }
 0x3d7   :  { %4183 = vmatmul.mubr.msk.bf16.vlgmr.msra.gmra.mrb[72].mxu1 %vm2221_vm2, %v2403_v48 }
 0x3d8   :  { %4193 = vmatpush3.bf16.msra.mxu1 %v2413_v13  ;;  %4194 = vmatprep.mubr.msk.bf16.mxu1 %vm4464_vm0, %v4463_v1  ;;  %v4367_v13 = vld [vmem:[%s5894_s5] sm:$0xff]  }
 0x3d9   :  { %4206 = vmatprep.subr.bf16.mxu1 %v4463_v1 }
 0x3e1   :  { %v2356_v34 = vpop.xlane.xlu0 %2355 }
 0x3e2   :  { %4431 = vrcp.f32 %v2356_v34 }
 0x3e3   :  { %v2359_v42 = vpop.xlane.xlu1 %2358 }
 0x3e4   :  { %4433 = vrcp.f32 %v2359_v42 }
 0x3e5   :  { %v2362_v9 = vpop.xlane.xlu0 %2361 }
 0x3e6   :  { %4435 = vrcp.f32 %v2362_v9 }
 0x3e7   :  { %v2365_v11 = vpop.xlane.xlu1 %2364 }
 0x3e8   :  { %4437 = vrcp.f32 %v2365_v11 }
 0x3ec   :  { %v4432_v10 = vpop.eup %4431 }
 0x3ed   :  { %v2394_v17 = vmul.f32 %v4432_v10, %v5736_v30 }
 0x3ee   :  { %v4434_v3 = vpop.eup %4433 }
 0x3ef   :  { %v2395_v43 = vmul.f32 %v4434_v3, %v5740_v36  ;;  %v4368_v36 = vld [vmem:[%s5894_s5 + $0x8] sm:$0xff]  }
 0x3f0   :  { %v4436_v45 = vpop.eup %4435 }
 0x3f1   :  { %v2404_v55 = vpack.c.bf16 %v2395_v43, %v2394_v17  ;;  %v2396_v58 = vmul.f32 %v4436_v45, %v5744_v32  ;;  %v4370_v32 = vld [vmem:[%s5894_s5 + $0x18] sm:$0xff]  }
 0x3f2   :  { %v4438_v54 = vpop.eup %4437 }
 0x3f3   :  { %v2397_v26 = vmul.f32 %v4438_v54, %v5748_v38  ;;  %4189 = vmatmul.mubr.msk.bf16.vlgmr.msra.gmra.mrb[76].mxu0 %vm2221_vm2, %v2404_v55 }
 0x3f4   :  { %4199 = vmatpush3.bf16.msra.mxu0 %v4367_v13  ;;  %4202 = vmatprep.mubr.msk.bf16.mxu0 %vm4464_vm0, %v4463_v1 }
 0x3f5   :  { %v2405_v30 = vpack.c.bf16 %v2397_v26, %v2396_v58  ;;  %4200 = vmatprep.subr.bf16.mxu0 %v4463_v1 }
 0x3f7   :  { %4195 = vmatmul.mubr.msk.bf16.vlgmr.msra.gmra.mrb[76].mxu1 %vm2221_vm2, %v2405_v30 }
 0x3f8   :  { %4210 = vmatprep.mubr.msk.bf16.mxu1 %vm4464_vm0, %v4463_v1  ;;  %4201 = vmatpush3.bf16.msra.mxu0 %v4368_v36 }
 0x3f9   :  { %4207 = vmatpush3.bf16.msra.mxu1 %v4369_v44  ;;  %4214 = vmatprep.subr.bf16.mxu0 %v4463_v1 }
 0x3fa   :  { %4208 = vmatprep.subr.bf16.mxu1 %v4463_v1 }
 0x3fd   :  { %4209 = vmatpush3.bf16.msra.mxu1 %v4370_v32 }
 0x3fe   :  { %4222 = vmatprep.subr.bf16.mxu1 %v4463_v1 }
 0x475   :  { %v2451_v6 = vpop.f32.mrb[64].mxu0 }
 0x476   :  { %v4154_v38 = vpop.f32.mrb[65].mxu0 }
 0x477   :  { %v2454_v56 = vpop.f32.mrb[66].mxu0 }
 0x478   :  { %v2766_v60 = vpack.c.bf16 %v2454_v56, %v2451_v6  ;;  %v4155_v61 = vpop.f32.mrb[67].mxu0 }
 0x479   :  { %v2495_v62 = vpop.f32.mrb[64].mxu1 }
 0x47a   :  { %v4160_v57 = vpop.f32.mrb[65].mxu1  ;;  %4203 = vmatmul.mubr.msk.bf16.vlgmr.msra.gmra.mrb[80].mxu0 %vm1844_vm1, %v2766_v60 }
 0x47b   :  { %v2498_v63 = vpop.f32.mrb[66].mxu1  ;;  %4215 = vmatpush3.bf16.msra.mxu0 %v4371_v59  ;;  %4218 = vmatprep.mubr.msk.bf16.mxu0 %vm4464_vm0, %v4463_v1 }
 0x47c   :  { %v2767_v7 = vpack.c.bf16 %v2498_v63, %v2495_v62  ;;  %v4161_v31 = vpop.f32.mrb[67].mxu1  ;;  %4216 = vmatprep.subr.bf16.mxu0 %v4463_v1 }
 0x47e   :  { %4211 = vmatmul.mubr.msk.bf16.vlgmr.msra.gmra.mrb[80].mxu1 %vm1844_vm1, %v2767_v7 }
 0x47f   :  { %4223 = vmatpush3.bf16.msra.mxu1 %v4373_v46  ;;  %4226 = vmatprep.mubr.msk.bf16.mxu1 %vm4464_vm0, %v4463_v1 }
 0x480   :  { %4217 = vmatpush3.bf16.msra.mxu0 %v4372_v2  ;;  %4224 = vmatprep.subr.bf16.mxu1 %v4463_v1 }
 0x481   :  { %4230 = vmatprep.subr.bf16.mxu0 %v4463_v1 }
 0x483   :  { %4225 = vmatpush3.bf16.msra.mxu1 %v4374_v51 }
 0x484   :  { %4238 = vmatprep.subr.bf16.mxu1 %v4463_v1 }
 0x486   :  { %v2539_v15 = vpop.f32.mrb[68].mxu0 }
 0x487   :  { %v4166_v18 = vpop.f32.mrb[69].mxu0 }
 0x488   :  { %v2542_v21 = vpop.f32.mrb[70].mxu0 }
 0x489   :  { %v2768_v23 = vpack.c.bf16 %v2542_v21, %v2539_v15  ;;  %v4167_v33 = vpop.f32.mrb[71].mxu0 }
 0x48a   :  { %v2583_v0 = vpop.f32.mrb[68].mxu1 }
 0x48b   :  { %v4172_v47 = vpop.f32.mrb[69].mxu1  ;;  %4219 = vmatmul.mubr.msk.bf16.vlgmr.msra.gmra.mrb[84].mxu0 %vm1844_vm1, %v2768_v23 }
 0x48c   :  { %v2586_v12 = vpop.f32.mrb[70].mxu1  ;;  %4231 = vmatpush3.bf16.msra.mxu0 %v4367_v13  ;;  %4234 = vmatprep.mubr.msk.bf16.mxu0 %vm4464_vm0, %v4463_v1 }
 0x48d   :  { %v2769_v20 = vpack.c.bf16 %v2586_v12, %v2583_v0  ;;  %v4173_v22 = vpop.f32.mrb[71].mxu1  ;;  %4232 = vmatprep.subr.bf16.mxu0 %v4463_v1 }
 0x48f   :  { %4227 = vmatmul.mubr.msk.bf16.vlgmr.msra.gmra.mrb[84].mxu1 %vm1844_vm1, %v2769_v20 }
 0x490   :  { %4233 = vmatpush3.bf16.msra.mxu0 %v4368_v36  ;;  %4239 = vmatpush3.bf16.msra.mxu1 %v4369_v44  ;;  %v3349_v36 = vld [vmem:[%s5895_s6] ss:$0 sm:$0xff]  ;;  %s4465_s6 = smov [#allocation2]  }
 0x491   :  { %4240 = vmatprep.subr.bf16.mxu1 %v4463_v1  ;;  %4242 = vmatprep.mubr.msk.bf16.mxu1 %vm4464_vm0, %v4463_v1  ;;  %s3206_s14 = sshll.u32 %s4465_s6, 4  ;;  %s3207_s14 = int_to_ptr.vmem [resolvable:$true] %s3206_s14 }
 0x492   :  { %4246 = vmatprep.subr.bf16.mxu0 %v4463_v1  ;;  %s4439_s1 = scalar_lea.vmem %s3207_s14, 512  ;;  %p4444_p1 = scmp.lt.s32.totalorder %s3207_s14, %s3207_s14 }
 0x493   :  { %p4440_p0 = scmp.ne.s32.totalorder %s3207_s14, %s4439_s1  ;;  %p4445_p2 = scmp.lt.s32.totalorder %s4439_s1, %s4439_s1 }
 0x494   :  { %4241 = vmatpush3.bf16.msra.mxu1 %v4370_v32 }
 0x495   :  { %4254 = vmatprep.subr.bf16.mxu1 %v4463_v1  ;;  %p4446_p3 = por %p4445_p2, %p4444_p1 }
 0x497   :  { %p4447_p4 = pnand %p4446_p3, %p4440_p0 }
 0x4a6   :  { %v2627_v4 = vpop.f32.mrb[72].mxu0 }
 0x4a7   :  { %v4178_v16 = vpop.f32.mrb[73].mxu0 }
 0x4a8   :  { %v2630_v5 = vpop.f32.mrb[74].mxu0 }
 0x4a9   :  { %v2770_v53 = vpack.c.bf16 %v2630_v5, %v2627_v4  ;;  %v4179_v41 = vpop.f32.mrb[75].mxu0 }
 0x4aa   :  { %v2671_v19 = vpop.f32.mrb[72].mxu1 }
 0x4ab   :  { %v4184_v24 = vpop.f32.mrb[73].mxu1  ;;  %4235 = vmatmul.mubr.msk.bf16.vlgmr.msra.gmra.mrb[88].mxu0 %vm1844_vm1, %v2770_v53 }
 0x4ac   :  { %v2674_v25 = vpop.f32.mrb[74].mxu1  ;;  %4247 = vmatpush3.bf16.msra.mxu0 %v4371_v59  ;;  %4250 = vmatprep.mubr.msk.bf16.mxu0 %vm4464_vm0, %v4463_v1 }
 0x4ad   :  { %v2771_v27 = vpack.c.bf16 %v2674_v25, %v2671_v19  ;;  %v4185_v35 = vpop.f32.mrb[75].mxu1  ;;  %4248 = vmatprep.subr.bf16.mxu0 %v4463_v1 }
 0x4af   :  { %4243 = vmatmul.mubr.msk.bf16.vlgmr.msra.gmra.mrb[88].mxu1 %vm1844_vm1, %v2771_v27 }
 0x4b0   :  { %4249 = vmatpush3.bf16.msra.mxu0 %v4372_v2  ;;  %4255 = vmatpush3.bf16.msra.mxu1 %v4373_v46 }
 0x4b1   :  { %4256 = vmatprep.subr.bf16.mxu1 %v4463_v1  ;;  %4258 = vmatprep.mubr.msk.bf16.mxu1 %vm4464_vm0, %v4463_v1 }
 0x4b4   :  { %4257 = vmatpush3.bf16.msra.mxu1 %v4374_v51 }
 0x4c6   :  { %v2715_v37 = vpop.f32.mrb[76].mxu0 }
 0x4c7   :  { %v4190_v49 = vpop.f32.mrb[77].mxu0 }
 0x4c8   :  { %v2718_v50 = vpop.f32.mrb[78].mxu0 }
 0x4c9   :  { %v2772_v28 = vpack.c.bf16 %v2718_v50, %v2715_v37  ;;  %v4191_v29 = vpop.f32.mrb[79].mxu0 }
 0x4ca   :  { %v2759_v39 = vpop.f32.mrb[76].mxu1 }
 0x4cb   :  { %v4196_v40 = vpop.f32.mrb[77].mxu1  ;;  %4251 = vmatmul.mubr.msk.bf16.vlgmr.msra.gmra.mrb[92].mxu0 %vm1844_vm1, %v2772_v28 }
 0x4cc   :  { %v2762_v52 = vpop.f32.mrb[78].mxu1 }
 0x4cd   :  { %v2773_v8 = vpack.c.bf16 %v2762_v52, %v2759_v39  ;;  %v4197_v14 = vpop.f32.mrb[79].mxu1 }
 0x4cf   :  { %4259 = vmatmul.mubr.msk.bf16.vlgmr.msra.gmra.mrb[92].mxu1 %vm1844_vm1, %v2773_v8 }
 0x54d   :  { %v2823_v48 = vpop.f32.mrb[80].mxu0 }
 0x54e   :  { %v4204_v34 = vpop.f32.mrb[81].mxu0 }
 0x54f   :  { %v2826_v42 = vpop.f32.mrb[82].mxu0 }
 0x550   :  { %v4205_v9 = vpop.f32.mrb[83].mxu0 }
 0x551   :  { %v2879_v1 = vpop.f32.mrb[80].mxu1 }
 0x552   :  { %v3174_v11 = vadd.f32 %v2879_v1, %v2823_v48  ;;  %v4212_v10 = vpop.f32.mrb[81].mxu1 }
 0x553   :  { %v2882_v3 = vpop.f32.mrb[82].mxu1 }
 0x554   :  { %v3177_v17 = vadd.f32 %v2882_v3, %v2826_v42  ;;  %v4213_v43 = vpop.f32.mrb[83].mxu1 }
 0x55e   :  { %v2935_v45 = vpop.f32.mrb[84].mxu0 }
 0x55f   :  { %v3175_v13 = vadd.f32 %v3174_v11, %v2935_v45  ;;  %v4220_v55 = vpop.f32.mrb[85].mxu0 }
 0x560   :  { %v2938_v54 = vpop.f32.mrb[86].mxu0 }
 0x561   :  { %v3178_v58 = vadd.f32 %v3177_v17, %v2938_v54  ;;  %v4221_v26 = vpop.f32.mrb[87].mxu0 }
 0x562   :  { %v2991_v30 = vpop.f32.mrb[84].mxu1 }
 0x563   :  { %v3176_v44 = vadd.f32 %v3175_v13, %v2991_v30  ;;  %v4228_v32 = vpop.f32.mrb[85].mxu1 }
 0x564   :  { %v2994_v6 = vpop.f32.mrb[86].mxu1 }
 0x565   :  { %v3193_v38 = vadd.f32 %v3349_v36, %v3176_v44  ;;  %v3179_v56 = vadd.f32 %v3178_v58, %v2994_v6  ;;  %v4229_v59 = vpop.f32.mrb[87].mxu1 }
 0x567   :  { %3197 = vst [vmem:[#allocation2] sm:$0xff] %v3193_v38  ;;  %v3194_v60 = vadd.f32 %v3349_v36, %v3179_v56 }
 0x569   :  { %3198 = vst [vmem:[#allocation2 + $0x8] sm:$0xff] %v3194_v60 }
 0x57e   :  { %v3035_v61 = vpop.f32.mrb[88].mxu0 }
 0x57f   :  { %v4236_v62 = vpop.f32.mrb[89].mxu0 }
 0x580   :  { %v3038_v57 = vpop.f32.mrb[90].mxu0 }
 0x581   :  { %v4237_v63 = vpop.f32.mrb[91].mxu0 }
 0x582   :  { %v3079_v46 = vpop.f32.mrb[88].mxu1 }
 0x583   :  { %v3180_v7 = vadd.f32 %v3079_v46, %v3035_v61  ;;  %v4244_v31 = vpop.f32.mrb[89].mxu1 }
 0x584   :  { %v3082_v2 = vpop.f32.mrb[90].mxu1 }
 0x585   :  { %v3183_v51 = vadd.f32 %v3082_v2, %v3038_v57  ;;  %v4245_v15 = vpop.f32.mrb[91].mxu1 }
 0x59e   :  { %v3123_v18 = vpop.f32.mrb[92].mxu0 }
 0x59f   :  { %v3181_v21 = vadd.f32 %v3180_v7, %v3123_v18  ;;  %v4252_v23 = vpop.f32.mrb[93].mxu0 }
 0x5a0   :  { %v3126_v33 = vpop.f32.mrb[94].mxu0 }
 0x5a1   :  { %v3184_v0 = vadd.f32 %v3183_v51, %v3126_v33  ;;  %v4253_v47 = vpop.f32.mrb[95].mxu0 }
 0x5a2   :  { %v3167_v12 = vpop.f32.mrb[92].mxu1 }
 0x5a3   :  { %v3182_v20 = vadd.f32 %v3181_v21, %v3167_v12  ;;  %v4260_v22 = vpop.f32.mrb[93].mxu1 }
 0x5a4   :  { %v3170_v4 = vpop.f32.mrb[94].mxu1 }
 0x5a5   :  { %v3195_v16 = vadd.f32 %v3349_v36, %v3182_v20  ;;  %v3185_v5 = vadd.f32 %v3184_v0, %v3170_v4  ;;  %v4261_v53 = vpop.f32.mrb[95].mxu1 }
 0x5a7   :  { %3199 = vst [vmem:[#allocation2 + $0x10] sm:$0xff] %v3195_v16  ;;  %v3196_v41 = vadd.f32 %v3349_v36, %v3185_v5 }
 0x5a9   :  { %3200 = vst [vmem:[#allocation2 + $0x18] sm:$0xff] %v3196_v41 }
 0x5aa   :  { %4450 = shalt.err (!%p4447_p4)
}
 0x5ab   :  { %s4451_s17 = scalar_lea.hbm %s5896_s7, 512 }
 0x5ac   :  { %p4452_p5 = scmp.ne.s32.totalorder %s5896_s7, %s4451_s17  ;;  %p4455_p6 = scmp.lt.u32.totalorder %s4451_s17, %s5896_s7 }
 0x5ae   :  { %p4457_p7 = pnand %p4455_p6, %p4452_p5 }
 0x5b0   :  { %4460 = shalt.err (!%p4457_p7)
}
 0x5b1   :  { %s4466_s21 = smov 128   ;;  %s4467_s0 = smov 8  }
 0x5b2   :  { %3212 = dma.vmem_to_hbm [thread:$0]  %s3207_s14, 512, %s5896_s7, [#allocation3], %s4466_s21, %s4466_s21, %s4467_s0  }
 0x5b3   :  { %4461 = dma.done.wait [#allocation3], 512  }
 0x5b4   :  { %4462 = vsyncadd [#allocation3], 4294966784 }
 0x5b5   :  { %3216 = vsyncpa [#allocation3], 1 }

</bundles_post_ra>
